<compile_context>
chip_gen: v5e
topology: v5e:2x2
jax: 0.10.0
libtpu: 0.0.40
codegen_flags: <defaults>
</compile_context>

<pallas_src>
import functools
import math

import jax
import jax.numpy as jnp
from jax import lax
from jax.experimental import pallas as pl
from jax.experimental.pallas import tpu as pltpu


# ----------------------------------------------------------------------------
# Kernel A: Q/K projection + batch-softmax of Q^T K + running query-max +
# batch-reduced Q max.  grid = (nj, ni); j = key tiles (parallel), i = query
# tiles (reduction axis, last, 'arbitrary').
# ----------------------------------------------------------------------------
def _attn_stats_kernel(xj_ref, xi_ref, wq_ref, bq_ref, wk_ref, bk_ref,
                       mrow_ref, qmax_ref, kcache, *, scale):
    i = pl.program_id(1)
    B = xi_ref.shape[0]

    # K tile for this j is reused across every i step: compute once, cache.
    # (single stacked bias add + single full-width store into the cache)
    @pl.when(i == 0)
    def _init_k():
        ks = [jnp.dot(wk_ref[...], xj_ref[b], preferred_element_type=jnp.float32)
              for b in range(B)]
        kcache[...] = (jnp.stack(ks) + bk_ref[...][None]).astype(jnp.bfloat16)

    # Q projection for this query tile (bf16 MXU inputs, f32 accumulation).
    qs = [jnp.dot(wq_ref[...], xi_ref[b], preferred_element_type=jnp.float32)
          for b in range(B)]
    q = jnp.stack(qs) + bq_ref[...][None]                      # (B, C, Ti) f32

    # Batch-reduced Q max, lane-dense (C, Ti).  The value only depends on i,
    # so every j writes identical data (benign; keeps the block defined).
    # The (c*H+h)%C class reduction happens on the host.
    qmax_ref[...] = jnp.max(q, axis=0)

    # S_b = scale * Q_b^T K_b  (contraction over channels) -> (B, Ti, Tj).
    qb16 = q.astype(jnp.bfloat16)
    ss = [lax.dot_general(qb16[b], kcache[b], (((0,), (0,)), ((), ())),
                          preferred_element_type=jnp.float32)
          for b in range(B)]
    s = jnp.stack(ss) * scale                                   # (B, Ti, Tj)

    # F.softmax(..., dim=0): softmax over the *batch* axis.  B is always the
    # full (untiled) batch in this kernel's BlockSpecs -- required for this
    # to be correct.
    smax = jnp.max(s, axis=0, keepdims=True)
    e = jnp.exp(s - smax)
    inv = pl.reciprocal(jnp.sum(e, axis=0, keepdims=True), approx=True)  # EUP
    p = e * inv                                                 # (B, Ti, Tj)

    # torch.max(mask_KQ, 1): running max over query positions (the i axis),
    # accumulated directly in the resident (B, Tj) output block (one
    # unmasked full-width store per step).
    pj = jnp.max(p, axis=1)                                     # (B, Tj)

    @pl.when(i == 0)
    def _first():
        mrow_ref[...] = pj

    @pl.when(i > 0)
    def _acc():
        mrow_ref[...] = jnp.maximum(mrow_ref[...], pj)


# ----------------------------------------------------------------------------
# Kernel B: V = Wv @ x (in-kernel, never hits HBM) fused with the
# outer-product mask, written directly in NCHW (channel-major) layout.
# grid = (pixel tiles,), purely parallel streaming kernel.
# ----------------------------------------------------------------------------
def _fuse_kernel(x_ref, wv_ref, bv_ref, m1_ref, q1_ref, expand_ref, o_ref):
    B = x_ref.shape[0]
    wv = wv_ref[...]                 # (C, C)  f32
    bv = bv_ref[...]                 # (C, 1)  f32
    q1 = q1_ref[...]                 # (C, Tp) f32 per-pixel Fuse_Q_mask
    expand = expand_ref[...]         # (Th, Tp) f32, host-built, resident
    m1 = m1_ref[...]                 # (Th, B, C) f32 per-image-row mask

    outs = []
    for b in range(B):
        # x streamed as bf16; upcast for a f32 V path (keeps precision margin).
        vb = jnp.dot(wv, x_ref[b].astype(jnp.float32),
                     preferred_element_type=jnp.float32) + bv          # (C, Tp)
        # Expand the per-image-row mask value to per-pixel on the MXU.
        m_exp = lax.dot_general(m1[:, b, :], expand,
                                (((0,), (0,)), ((), ())),
                                preferred_element_type=jnp.float32)     # (C, Tp)
        outs.append(vb * (1.0 + m_exp * q1))                            # V + V*mask
    o_ref[...] = jnp.stack(outs)


# ----------------------------------------------------------------------------
# Wrapper
# ----------------------------------------------------------------------------
def _pick_tile(total, preferred, align):
    """Largest multiple of `align` that divides `total` and is <= preferred
    (preferred is clamped up to `align`).  None if no such tile exists."""
    best = None
    t = align
    limit = min(max(preferred, align), total)
    while t <= limit:
        if total % t == 0:
            best = t
        t += align
    return best


def _vmem_limit_bytes():
    """~75% of physical VMEM (works for 64 MiB v7x and 128 MiB v5e/v6e)."""
    try:
        cap = pltpu.get_tpu_info().vmem_capacity_bytes
        return min(int(cap) * 3 // 4, 100 * 1024 * 1024)
    except Exception:
        return 48 * 1024 * 1024  # safe default on every current part


def mute_forward(x_nchw, params, *, tile_q=256, tile_k=1024, tile_px=512):
    B, C, H, W = x_nchw.shape
    P = H * W
    scale = 1.0 / (C ** 0.5)
    f32, bf16 = jnp.float32, jnp.bfloat16

    # NCHW is already channel-major (B, C, P): free reshape, no transpose.
    # Stream x as bf16: halves HBM traffic for both kernels.
    xb = x_nchw.reshape(B, C, P).astype(bf16)

    # Kernel-A tiles only need 128-lane alignment (the Fuse_Q_mask class
    # reduction moved to the host, so no W-alignment constraint here).
    Ti = _pick_tile(P, tile_q, 128)
    Tj = _pick_tile(P, tile_k, 128)
    # Kernel-B tile additionally must cover whole image rows (multiple of W).
    lane_w = (128 * W) // math.gcd(128, W)
    Tp = _pick_tile(P, max(tile_px, lane_w), lane_w)

    if Ti is None or Tj is None:
        # No 128-aligned tile divides P: single full-P tile is only safe while
        # the in-kernel (B, P, P) score tensor stays small.
        if B * P * P * 4 > (4 << 20):
            # TODO(synk): pad the pixel axis to a multiple of 128 with masked
            # query/key positions instead of bailing out for awkward H*W.
            raise ValueError(
                f"H*W={P} has no 128-aligned divisor and is too large for the "
                "single-tile fallback")
        Ti = Ti if Ti is not None else P
        Tj = Tj if Tj is not None else P
    if Tp is None:
        Tp = P
    ni, nj, npx = P // Ti, P // Tj, P // Tp
    # NOTE(v7x): prefer tile_k / tile_px choices that keep nj, npx >= 2 so the
    # 'parallel' grid axes can be sharded across both TensorCores.

    wq = params['wq'].astype(bf16)
    wk = params['wk'].astype(bf16)
    wv = params['wv'].astype(f32)       # V feeds the output directly: keep f32
    bq = params['bq'].reshape(C, 1).astype(f32)
    bk = params['bk'].reshape(C, 1).astype(f32)
    bv = params['bv'].reshape(C, 1).astype(f32)

    vmem_limit = _vmem_limit_bytes()

    kern_a = functools.partial(_attn_stats_kernel, scale=scale)
    mrow, qmax = pl.pallas_call(
        kern_a,
        grid=(nj, ni),
        in_specs=[
            pl.BlockSpec((B, C, Tj), lambda j, i: (0, 0, j)),   # x for K tiles (bf16)
            pl.BlockSpec((B, C, Ti), lambda j, i: (0, 0, i)),   # x for Q tiles (bf16)
            pl.BlockSpec((C, C), lambda j, i: (0, 0)),          # Wq (bf16)
            pl.BlockSpec((C, 1), lambda j, i: (0, 0)),          # bq
            pl.BlockSpec((C, C), lambda j, i: (0, 0)),          # Wk (bf16)
            pl.BlockSpec((C, 1), lambda j, i: (0, 0)),          # bk
        ],
        out_specs=(
            pl.BlockSpec((B, Tj), lambda j, i: (0, j)),         # max over queries
            pl.BlockSpec((C, Ti), lambda j, i: (0, i)),         # batch-reduced Q max
        ),
        out_shape=(
            jax.ShapeDtypeStruct((B, P), f32),
            jax.ShapeDtypeStruct((C, P), f32),
        ),
        scratch_shapes=[pltpu.VMEM((B, C, Tj), bf16)],          # K cache (per j)
        compiler_params=pltpu.CompilerParams(
            dimension_semantics=("parallel", "arbitrary"),
            vmem_limit_bytes=vmem_limit,
        ),
    )(xb, xb, wq, bq, wk, bk)

    # Tiny host-side reductions / gathers (O(B*H), O(C*P) elements).
    m_row = jnp.max(mrow.reshape(B, H, W), axis=-1)             # (B, H)
    ch = jnp.arange(C)[:, None] * H + jnp.arange(H)[None, :]    # (C, H)
    cls = ch % C
    # Fuse_Q_mask: segment max over (c, h) classes (c*H+h) % C, keeping w.
    q_cls = jnp.full((C, W), -jnp.inf, f32).at[cls].max(qmax.reshape(C, H, W))
    q1 = q_cls[cls].reshape(C, P)                               # per-pixel (C, P)
    m1 = jnp.transpose(m_row[:, ch // C], (2, 0, 1))            # (H, B, C)

    Th = Tp // W
    # Row -> pixel expansion matrix, identical for every pixel tile: built on
    # the host once and kept resident in VMEM (constant index_map).
    expand = (jnp.arange(Tp)[None, :] // W ==
              jnp.arange(Th)[:, None]).astype(f32)              # (Th, Tp)

    out = pl.pallas_call(
        _fuse_kernel,
        grid=(npx,),
        in_specs=[
            pl.BlockSpec((B, C, Tp), lambda p: (0, 0, p)),      # x (bf16)
            pl.BlockSpec((C, C), lambda p: (0, 0)),             # Wv (f32)
            pl.BlockSpec((C, 1), lambda p: (0, 0)),             # bv
            pl.BlockSpec((Th, B, C), lambda p: (p, 0, 0)),      # per-row mask
            pl.BlockSpec((C, Tp), lambda p: (0, p)),            # per-pixel Q mask
            pl.BlockSpec((Th, Tp), lambda p: (0, 0)),           # expand (resident)
        ],
        out_specs=pl.BlockSpec((B, C, Tp), lambda p: (0, 0, p)),
        out_shape=jax.ShapeDtypeStruct((B, C, P), f32),
        compiler_params=pltpu.CompilerParams(
            dimension_semantics=("parallel",),
            vmem_limit_bytes=vmem_limit,
        ),
    )(xb, wv, bv, m1, q1, expand)

    return out.reshape(B, C, H, W)


# ----------------------------------------------------------------------------
# Pure-JAX reference mirroring the PyTorch forward literally.
# ----------------------------------------------------------------------------
def mute_reference(x, params):
    B, C, H, W = x.shape
    scale = 1.0 / (C ** 0.5)

    def conv1x1(xx, w, b):
        return jnp.einsum('oc,bchw->bohw', w, xx) + b[None, :, None, None]

    Q = conv1x1(x, params['wq'], params['bq'])
    K = conv1x1(x, params['wk'], params['bk'])
    V = conv1x1(x, params['wv'], params['bv'])

    fuse_Query = Q.reshape(B, C, H * W)
    fuse_Q_mask = fuse_Query.reshape(B * H, C * W)
    fuse_Query_t = jnp.transpose(fuse_Query, (0, 2, 1))
    fuse_Key = K.reshape(B, C, H * W)
    Fuse_Q_mask = jnp.max(fuse_Q_mask, axis=0, keepdims=True)
    mask_KQ = jnp.matmul(fuse_Query_t, fuse_Key) * scale
    mask_KQ = jax.nn.softmax(mask_KQ, axis=0)
    mask_KQ = jnp.max(mask_KQ, axis=1)
    mask_KQ = mask_KQ.reshape(-1, W)
    mask_KQ = jnp.max(mask_KQ, axis=-1, keepdims=True)
    mask = jnp.matmul(mask_KQ, Fuse_Q_mask).reshape(B, C, H, W)
    return V + V * mask


def init_params(key, C):
    ks = jax.random.split(key, 6)
    std = 1.0 / (C ** 0.5)
    return {
        'wq': jax.random.normal(ks[0], (C, C), jnp.float32) * std,
        'bq': jax.random.normal(ks[1], (C,), jnp.float32) * 0.1,
        'wk': jax.random.normal(ks[2], (C, C), jnp.float32) * std,
        'bk': jax.random.normal(ks[3], (C,), jnp.float32) * 0.1,
        'wv': jax.random.normal(ks[4], (C, C), jnp.float32) * std,
        'bv': jax.random.normal(ks[5], (C,), jnp.float32) * 0.1,
    }


if __name__ == "__main__":
    key = jax.random.PRNGKey(0)
    kx, kp = jax.random.split(key)
    B, C, H, W = 2, 4, 16, 16
    x = jax.random.normal(kx, (B, C, H, W), jnp.float32)
    params = init_params(kp, C)

    # Small tiles here so the 2x2 grid / accumulator / finalize paths are all
    # exercised at this tiny test shape; the larger defaults (tile_k=1024,
    # tile_px=512) are what realistic H, W should use.
    fwd = jax.jit(functools.partial(mute_forward,
                                    tile_q=128, tile_k=128, tile_px=128))
    out = jax.block_until_ready(fwd(x, params))

    ref = mute_reference(x, params)
    assert out.shape == (B, C, H, W), out.shape
    if not jnp.allclose(out, ref, rtol=2e-2, atol=2e-2):
        max_err = float(jnp.max(jnp.abs(out - ref)))
        raise AssertionError(f"kernel output mismatch vs reference, max abs err={max_err}")
    print("KERNEL_OK")
</pallas_src>

<mosaic_0001>
module attributes {stable_mosaic.version = 11 : i64} {
  func.func @_attn_stats_kernel(%arg0: i32, %arg1: i32, %arg2: memref<2x4x128xbf16, #tpu.memory_space<vmem>>, %arg3: memref<2x4x128xbf16, #tpu.memory_space<vmem>>, %arg4: memref<4x4xbf16, #tpu.memory_space<vmem>>, %arg5: memref<4x1xf32, #tpu.memory_space<vmem>>, %arg6: memref<4x4xbf16, #tpu.memory_space<vmem>>, %arg7: memref<4x1xf32, #tpu.memory_space<vmem>>, %arg8: memref<2x128xf32, #tpu.memory_space<vmem>>, %arg9: memref<4x128xf32, #tpu.memory_space<vmem>>, %arg10: memref<2x4x128xbf16, #tpu.memory_space<vmem>>) attributes {dimension_semantics = [#tpu.dimension_semantics<parallel>, #tpu.dimension_semantics<arbitrary>], iteration_bounds = array<i64: 2, 2>, scalar_prefetch = 0 : i64, scratch_operands = 1 : i64, tpu.core_type = #tpu.core_type<tc>, window_params = [{transform_indices = @transform_0, window_bounds = array<i64: 2, 4, 128>}, {transform_indices = @transform_1, window_bounds = array<i64: 2, 4, 128>}, {pipeline_mode = #tpu.pipeline_mode<synchronous>, transform_indices = @transform_2, window_bounds = array<i64: 4, 4>}, {pipeline_mode = #tpu.pipeline_mode<synchronous>, transform_indices = @transform_3, window_bounds = array<i64: 4, 1>}, {pipeline_mode = #tpu.pipeline_mode<synchronous>, transform_indices = @transform_4, window_bounds = array<i64: 4, 4>}, {pipeline_mode = #tpu.pipeline_mode<synchronous>, transform_indices = @transform_5, window_bounds = array<i64: 4, 1>}, {transform_indices = @transform_6, window_bounds = array<i64: 2, 128>}, {transform_indices = @transform_7, window_bounds = array<i64: 4, 128>}]} {
    %c0_i32 = arith.constant 0 : i32
    %0 = arith.cmpi eq, %arg1, %c0_i32 : i32
    %1 = arith.extui %0 : i1 to i32
    %c0_i32_0 = arith.constant 0 : i32
    %2 = arith.cmpi ne, %1, %c0_i32_0 : i32
    scf.if %2 {
      %c0_31 = arith.constant 0 : index
      %c0_32 = arith.constant 0 : index
      %53 = vector.load %arg6[%c0_31, %c0_32] : memref<4x4xbf16, #tpu.memory_space<vmem>>, vector<4x4xbf16>
      %c0_33 = arith.constant 0 : index
      %c0_34 = arith.constant 0 : index
      %c0_35 = arith.constant 0 : index
      %54 = vector.load %arg2[%c0_33, %c0_34, %c0_35] : memref<2x4x128xbf16, #tpu.memory_space<vmem>>, vector<1x4x128xbf16>
      %55 = vector.shape_cast %54 : vector<1x4x128xbf16> to vector<4x128xbf16>
      %cst_36 = arith.constant dense<0.000000e+00> : vector<4x128xf32>
      %56 = tpu.matmul %53, %55, %cst_36 {dimension_numbers = #tpu.dot_dimension_numbers<[1], [0], [0], [1], [0, 0, 1, 1], [], []>} : vector<4x4xbf16>, vector<4x128xbf16>, vector<4x128xf32> -> vector<4x128xf32>
      %c0_37 = arith.constant 0 : index
      %c0_38 = arith.constant 0 : index
      %57 = vector.load %arg6[%c0_37, %c0_38] : memref<4x4xbf16, #tpu.memory_space<vmem>>, vector<4x4xbf16>
      %c1_39 = arith.constant 1 : index
      %c0_40 = arith.constant 0 : index
      %c0_41 = arith.constant 0 : index
      %58 = vector.load %arg2[%c1_39, %c0_40, %c0_41] : memref<2x4x128xbf16, #tpu.memory_space<vmem>>, vector<1x4x128xbf16>
      %59 = vector.shape_cast %58 : vector<1x4x128xbf16> to vector<4x128xbf16>
      %cst_42 = arith.constant dense<0.000000e+00> : vector<4x128xf32>
      %60 = tpu.matmul %57, %59, %cst_42 {dimension_numbers = #tpu.dot_dimension_numbers<[1], [0], [0], [1], [0, 0, 1, 1], [], []>} : vector<4x4xbf16>, vector<4x128xbf16>, vector<4x128xf32> -> vector<4x128xf32>
      %61 = vector.shape_cast %56 : vector<4x128xf32> to vector<1x4x128xf32>
      %62 = vector.shape_cast %60 : vector<4x128xf32> to vector<1x4x128xf32>
      %63 = tpu.concatenate %61, %62 in 0 : vector<1x4x128xf32>, vector<1x4x128xf32> -> vector<2x4x128xf32>
      %c0_43 = arith.constant 0 : index
      %c0_44 = arith.constant 0 : index
      %64 = vector.load %arg7[%c0_43, %c0_44] : memref<4x1xf32, #tpu.memory_space<vmem>>, vector<4x1xf32>
      %65 = vector.shape_cast %64 : vector<4x1xf32> to vector<1x4x1xf32>
      %66 = vector.broadcast %65 : vector<1x4x1xf32> to vector<2x4x128xf32>
      %67 = arith.addf %63, %66 : vector<2x4x128xf32>
      %68 = arith.truncf %67 : vector<2x4x128xf32> to vector<2x4x128xbf16>
      %c0_45 = arith.constant 0 : index
      %c0_46 = arith.constant 0 : index
      %c0_47 = arith.constant 0 : index
      %69 = vector.load %arg10[%c0_45, %c0_46, %c0_47] : memref<2x4x128xbf16, #tpu.memory_space<vmem>>, vector<2x4x128xbf16>
      tpu.vector_store %arg10[%c0_45, %c0_46, %c0_47], %68 {strides = array<i32>} : memref<2x4x128xbf16, #tpu.memory_space<vmem>>, vector<2x4x128xbf16>,
    } else {
    }
    %c0 = arith.constant 0 : index
    %c0_1 = arith.constant 0 : index
    %3 = vector.load %arg4[%c0, %c0_1] : memref<4x4xbf16, #tpu.memory_space<vmem>>, vector<4x4xbf16>
    %c0_2 = arith.constant 0 : index
    %c0_3 = arith.constant 0 : index
    %c0_4 = arith.constant 0 : index
    %4 = vector.load %arg3[%c0_2, %c0_3, %c0_4] : memref<2x4x128xbf16, #tpu.memory_space<vmem>>, vector<1x4x128xbf16>
    %5 = vector.shape_cast %4 : vector<1x4x128xbf16> to vector<4x128xbf16>
    %cst = arith.constant dense<0.000000e+00> : vector<4x128xf32>
    %6 = tpu.matmul %3, %5, %cst {dimension_numbers = #tpu.dot_dimension_numbers<[1], [0], [0], [1], [0, 0, 1, 1], [], []>} : vector<4x4xbf16>, vector<4x128xbf16>, vector<4x128xf32> -> vector<4x128xf32>
    %c0_5 = arith.constant 0 : index
    %c0_6 = arith.constant 0 : index
    %7 = vector.load %arg4[%c0_5, %c0_6] : memref<4x4xbf16, #tpu.memory_space<vmem>>, vector<4x4xbf16>
    %c1 = arith.constant 1 : index
    %c0_7 = arith.constant 0 : index
    %c0_8 = arith.constant 0 : index
    %8 = vector.load %arg3[%c1, %c0_7, %c0_8] : memref<2x4x128xbf16, #tpu.memory_space<vmem>>, vector<1x4x128xbf16>
    %9 = vector.shape_cast %8 : vector<1x4x128xbf16> to vector<4x128xbf16>
    %cst_9 = arith.constant dense<0.000000e+00> : vector<4x128xf32>
    %10 = tpu.matmul %7, %9, %cst_9 {dimension_numbers = #tpu.dot_dimension_numbers<[1], [0], [0], [1], [0, 0, 1, 1], [], []>} : vector<4x4xbf16>, vector<4x128xbf16>, vector<4x128xf32> -> vector<4x128xf32>
    %11 = vector.shape_cast %6 : vector<4x128xf32> to vector<1x4x128xf32>
    %12 = vector.shape_cast %10 : vector<4x128xf32> to vector<1x4x128xf32>
    %13 = tpu.concatenate %11, %12 in 0 : vector<1x4x128xf32>, vector<1x4x128xf32> -> vector<2x4x128xf32>
    %c0_10 = arith.constant 0 : index
    %c0_11 = arith.constant 0 : index
    %14 = vector.load %arg5[%c0_10, %c0_11] : memref<4x1xf32, #tpu.memory_space<vmem>>, vector<4x1xf32>
    %15 = vector.shape_cast %14 : vector<4x1xf32> to vector<1x4x1xf32>
    %16 = vector.broadcast %15 : vector<1x4x1xf32> to vector<2x4x128xf32>
    %17 = arith.addf %13, %16 : vector<2x4x128xf32>
    %cst_12 = arith.constant dense<0xFF800000> : vector<4x128xf32>
    %18 = vector.multi_reduction <maximumf>, %17, %cst_12 [0] : vector<2x4x128xf32> to vector<4x128xf32>
    %c0_13 = arith.constant 0 : index
    %c0_14 = arith.constant 0 : index
    %19 = vector.load %arg9[%c0_13, %c0_14] : memref<4x128xf32, #tpu.memory_space<vmem>>, vector<4x128xf32>
    tpu.vector_store %arg9[%c0_13, %c0_14], %18 {strides = array<i32>} : memref<4x128xf32, #tpu.memory_space<vmem>>, vector<4x128xf32>,
    %20 = arith.truncf %17 : vector<2x4x128xf32> to vector<2x4x128xbf16>
    %21 = vector.extract_strided_slice %20 {offsets = [0, 0, 0], sizes = [1, 4, 128], strides = [1, 1, 1]} : vector<2x4x128xbf16> to vector<1x4x128xbf16>
    %22 = vector.shape_cast %21 : vector<1x4x128xbf16> to vector<4x128xbf16>
    %c0_15 = arith.constant 0 : index
    %c0_16 = arith.constant 0 : index
    %c0_17 = arith.constant 0 : index
    %23 = vector.load %arg10[%c0_15, %c0_16, %c0_17] : memref<2x4x128xbf16, #tpu.memory_space<vmem>>, vector<1x4x128xbf16>
    %24 = vector.shape_cast %23 : vector<1x4x128xbf16> to vector<4x128xbf16>
    %cst_18 = arith.constant dense<0.000000e+00> : vector<128x128xf32>
    %25 = tpu.matmul %22, %24, %cst_18 {dimension_numbers = #tpu.dot_dimension_numbers<[0], [0], [1], [1], [0, 1, 1, 1], [], []>} : vector<4x128xbf16>, vector<4x128xbf16>, vector<128x128xf32> -> vector<128x128xf32>
    %26 = vector.extract_strided_slice %20 {offsets = [1, 0, 0], sizes = [1, 4, 128], strides = [1, 1, 1]} : vector<2x4x128xbf16> to vector<1x4x128xbf16>
    %27 = vector.shape_cast %26 : vector<1x4x128xbf16> to vector<4x128xbf16>
    %c1_19 = arith.constant 1 : index
    %c0_20 = arith.constant 0 : index
    %c0_21 = arith.constant 0 : index
    %28 = vector.load %arg10[%c1_19, %c0_20, %c0_21] : memref<2x4x128xbf16, #tpu.memory_space<vmem>>, vector<1x4x128xbf16>
    %29 = vector.shape_cast %28 : vector<1x4x128xbf16> to vector<4x128xbf16>
    %cst_22 = arith.constant dense<0.000000e+00> : vector<128x128xf32>
    %30 = tpu.matmul %27, %29, %cst_22 {dimension_numbers = #tpu.dot_dimension_numbers<[0], [0], [1], [1], [0, 1, 1, 1], [], []>} : vector<4x128xbf16>, vector<4x128xbf16>, vector<128x128xf32> -> vector<128x128xf32>
    %31 = vector.shape_cast %25 : vector<128x128xf32> to vector<1x128x128xf32>
    %32 = vector.shape_cast %30 : vector<128x128xf32> to vector<1x128x128xf32>
    %33 = tpu.concatenate %31, %32 in 0 : vector<1x128x128xf32>, vector<1x128x128xf32> -> vector<2x128x128xf32>
    %cst_23 = arith.constant 5.000000e-01 : f32
    %34 = vector.broadcast %cst_23 : f32 to vector<2x128x128xf32>
    %35 = arith.mulf %33, %34 : vector<2x128x128xf32>
    %cst_24 = arith.constant dense<0xFF800000> : vector<128x128xf32>
    %36 = vector.multi_reduction <maximumf>, %35, %cst_24 [0] : vector<2x128x128xf32> to vector<128x128xf32>
    %37 = vector.shape_cast %36 : vector<128x128xf32> to vector<1x128x128xf32>
    %38 = vector.broadcast %37 : vector<1x128x128xf32> to vector<2x128x128xf32>
    %39 = arith.subf %35, %38 : vector<2x128x128xf32>
    %40 = math.exp %39 : vector<2x128x128xf32>
    %cst_25 = arith.constant dense<0.000000e+00> : vector<128x128xf32>
    %41 = vector.multi_reduction <add>, %40, %cst_25 [0] : vector<2x128x128xf32> to vector<128x128xf32>
    %42 = vector.shape_cast %41 : vector<128x128xf32> to vector<1x128x128xf32>
    %43 = tpu.reciprocal %42 {approx = true} : vector<1x128x128xf32> -> vector<1x128x128xf32>
    %44 = vector.broadcast %43 : vector<1x128x128xf32> to vector<2x128x128xf32>
    %45 = arith.mulf %40, %44 : vector<2x128x128xf32>
    %cst_26 = arith.constant dense<0xFF800000> : vector<2x128xf32>
    %46 = vector.multi_reduction <maximumf>, %45, %cst_26 [1] : vector<2x128x128xf32> to vector<2x128xf32>
    %c0_i32_27 = arith.constant 0 : i32
    %47 = arith.cmpi eq, %arg1, %c0_i32_27 : i32
    %48 = arith.extui %47 : i1 to i32
    %c0_i32_28 = arith.constant 0 : i32
    %49 = arith.cmpi ne, %48, %c0_i32_28 : i32
    scf.if %49 {
      %c0_31 = arith.constant 0 : index
      %c0_32 = arith.constant 0 : index
      %53 = vector.load %arg8[%c0_31, %c0_32] : memref<2x128xf32, #tpu.memory_space<vmem>>, vector<2x128xf32>
      tpu.vector_store %arg8[%c0_31, %c0_32], %46 {strides = array<i32>} : memref<2x128xf32, #tpu.memory_space<vmem>>, vector<2x128xf32>,
    } else {
    }
    %c0_i32_29 = arith.constant 0 : i32
    %50 = arith.cmpi sgt, %arg1, %c0_i32_29 : i32
    %51 = arith.extui %50 : i1 to i32
    %c0_i32_30 = arith.constant 0 : i32
    %52 = arith.cmpi ne, %51, %c0_i32_30 : i32
    scf.if %52 {
      %c0_31 = arith.constant 0 : index
      %c0_32 = arith.constant 0 : index
      %53 = vector.load %arg8[%c0_31, %c0_32] : memref<2x128xf32, #tpu.memory_space<vmem>>, vector<2x128xf32>
      %54 = arith.maximumf %53, %46 : vector<2x128xf32>
      %c0_33 = arith.constant 0 : index
      %c0_34 = arith.constant 0 : index
      %55 = vector.load %arg8[%c0_33, %c0_34] : memref<2x128xf32, #tpu.memory_space<vmem>>, vector<2x128xf32>
      tpu.vector_store %arg8[%c0_33, %c0_34], %54 {strides = array<i32>} : memref<2x128xf32, #tpu.memory_space<vmem>>, vector<2x128xf32>,
    } else {
    }
    return
  }
  func.func @transform_0(%arg0: i32, %arg1: i32) -> (i32, i32, i32) {
    %c0_i32 = arith.constant 0 : i32
    %c0_i32_0 = arith.constant 0 : i32
    %c0_i32_1 = arith.constant 0 : i32
    return %c0_i32, %c0_i32_0, %arg0 : i32, i32, i32
  }
  func.func @transform_1(%arg0: i32, %arg1: i32) -> (i32, i32, i32) {
    %c0_i32 = arith.constant 0 : i32
    %c0_i32_0 = arith.constant 0 : i32
    %c0_i32_1 = arith.constant 0 : i32
    return %c0_i32, %c0_i32_0, %arg1 : i32, i32, i32
  }
  func.func @transform_2(%arg0: i32, %arg1: i32) -> (i32, i32) {
    %c0_i32 = arith.constant 0 : i32
    %c0_i32_0 = arith.constant 0 : i32
    %c0_i32_1 = arith.constant 0 : i32
    return %c0_i32, %c0_i32_0 : i32, i32
  }
  func.func @transform_3(%arg0: i32, %arg1: i32) -> (i32, i32) {
    %c0_i32 = arith.constant 0 : i32
    %c0_i32_0 = arith.constant 0 : i32
    %c0_i32_1 = arith.constant 0 : i32
    return %c0_i32, %c0_i32_0 : i32, i32
  }
  func.func @transform_4(%arg0: i32, %arg1: i32) -> (i32, i32) {
    %c0_i32 = arith.constant 0 : i32
    %c0_i32_0 = arith.constant 0 : i32
    %c0_i32_1 = arith.constant 0 : i32
    return %c0_i32, %c0_i32_0 : i32, i32
  }
  func.func @transform_5(%arg0: i32, %arg1: i32) -> (i32, i32) {
    %c0_i32 = arith.constant 0 : i32
    %c0_i32_0 = arith.constant 0 : i32
    %c0_i32_1 = arith.constant 0 : i32
    return %c0_i32, %c0_i32_0 : i32, i32
  }
  func.func @transform_6(%arg0: i32, %arg1: i32) -> (i32, i32) {
    %c0_i32 = arith.constant 0 : i32
    %c0_i32_0 = arith.constant 0 : i32
    return %c0_i32, %arg0 : i32, i32
  }
  func.func @transform_7(%arg0: i32, %arg1: i32) -> (i32, i32) {
    %c0_i32 = arith.constant 0 : i32
    %c0_i32_0 = arith.constant 0 : i32
    return %c0_i32, %arg1 : i32, i32
  }
}

module attributes {stable_mosaic.version = 11 : i64} {
  func.func @_fuse_kernel(%arg0: i32, %arg1: memref<2x4x128xbf16, #tpu.memory_space<vmem>>, %arg2: memref<4x4xf32, #tpu.memory_space<vmem>>, %arg3: memref<4x1xf32, #tpu.memory_space<vmem>>, %arg4: memref<8x2x4xf32, #tpu.memory_space<vmem>>, %arg5: memref<4x128xf32, #tpu.memory_space<vmem>>, %arg6: memref<8x128xf32, #tpu.memory_space<vmem>>, %arg7: memref<2x4x128xf32, #tpu.memory_space<vmem>>) attributes {dimension_semantics = [#tpu.dimension_semantics<parallel>], iteration_bounds = array<i64: 2>, scalar_prefetch = 0 : i64, scratch_operands = 0 : i64, tpu.core_type = #tpu.core_type<tc>, window_params = [{transform_indices = @transform_0, window_bounds = array<i64: 2, 4, 128>}, {pipeline_mode = #tpu.pipeline_mode<synchronous>, transform_indices = @transform_1, window_bounds = array<i64: 4, 4>}, {pipeline_mode = #tpu.pipeline_mode<synchronous>, transform_indices = @transform_2, window_bounds = array<i64: 4, 1>}, {transform_indices = @transform_3, window_bounds = array<i64: 8, 2, 4>}, {transform_indices = @transform_4, window_bounds = array<i64: 4, 128>}, {pipeline_mode = #tpu.pipeline_mode<synchronous>, transform_indices = @transform_5, window_bounds = array<i64: 8, 128>}, {transform_indices = @transform_6, window_bounds = array<i64: 2, 4, 128>}]} {
    %c0 = arith.constant 0 : index
    %c0_0 = arith.constant 0 : index
    %0 = vector.load %arg2[%c0, %c0_0] : memref<4x4xf32, #tpu.memory_space<vmem>>, vector<4x4xf32>
    %c0_1 = arith.constant 0 : index
    %c0_2 = arith.constant 0 : index
    %1 = vector.load %arg3[%c0_1, %c0_2] : memref<4x1xf32, #tpu.memory_space<vmem>>, vector<4x1xf32>
    %c0_3 = arith.constant 0 : index
    %c0_4 = arith.constant 0 : index
    %2 = vector.load %arg5[%c0_3, %c0_4] : memref<4x128xf32, #tpu.memory_space<vmem>>, vector<4x128xf32>
    %c0_5 = arith.constant 0 : index
    %c0_6 = arith.constant 0 : index
    %3 = vector.load %arg6[%c0_5, %c0_6] : memref<8x128xf32, #tpu.memory_space<vmem>>, vector<8x128xf32>
    %c0_7 = arith.constant 0 : index
    %c0_8 = arith.constant 0 : index
    %c0_9 = arith.constant 0 : index
    %4 = vector.load %arg4[%c0_7, %c0_8, %c0_9] : memref<8x2x4xf32, #tpu.memory_space<vmem>>, vector<8x2x4xf32>
    %c0_10 = arith.constant 0 : index
    %c0_11 = arith.constant 0 : index
    %c0_12 = arith.constant 0 : index
    %5 = vector.load %arg1[%c0_10, %c0_11, %c0_12] : memref<2x4x128xbf16, #tpu.memory_space<vmem>>, vector<1x4x128xbf16>
    %6 = vector.shape_cast %5 : vector<1x4x128xbf16> to vector<4x128xbf16>
    %7 = arith.extf %6 : vector<4x128xbf16> to vector<4x128xf32>
    %cst = arith.constant dense<0.000000e+00> : vector<4x128xf32>
    %8 = tpu.matmul %0, %7, %cst {dimension_numbers = #tpu.dot_dimension_numbers<[1], [0], [0], [1], [0, 0, 1, 1], [], []>} : vector<4x4xf32>, vector<4x128xf32>, vector<4x128xf32> -> vector<4x128xf32>
    %9 = vector.broadcast %1 : vector<4x1xf32> to vector<4x128xf32>
    %10 = arith.addf %8, %9 : vector<4x128xf32>
    %11 = vector.extract_strided_slice %4 {offsets = [0, 0, 0], sizes = [8, 1, 4], strides = [1, 1, 1]} : vector<8x2x4xf32> to vector<8x1x4xf32>
    %12 = vector.shape_cast %11 : vector<8x1x4xf32> to vector<8x4xf32>
    %cst_13 = arith.constant dense<0.000000e+00> : vector<4x128xf32>
    %13 = tpu.matmul %12, %3, %cst_13 {dimension_numbers = #tpu.dot_dimension_numbers<[0], [0], [1], [1], [0, 1, 1, 1], [], []>} : vector<8x4xf32>, vector<8x128xf32>, vector<4x128xf32> -> vector<4x128xf32>
    %14 = arith.mulf %13, %2 : vector<4x128xf32>
    %cst_14 = arith.constant 1.000000e+00 : f32
    %15 = vector.broadcast %cst_14 : f32 to vector<4x128xf32>
    %16 = arith.addf %15, %14 : vector<4x128xf32>
    %17 = arith.mulf %10, %16 : vector<4x128xf32>
    %c1 = arith.constant 1 : index
    %c0_15 = arith.constant 0 : index
    %c0_16 = arith.constant 0 : index
    %18 = vector.load %arg1[%c1, %c0_15, %c0_16] : memref<2x4x128xbf16, #tpu.memory_space<vmem>>, vector<1x4x128xbf16>
    %19 = vector.shape_cast %18 : vector<1x4x128xbf16> to vector<4x128xbf16>
    %20 = arith.extf %19 : vector<4x128xbf16> to vector<4x128xf32>
    %cst_17 = arith.constant dense<0.000000e+00> : vector<4x128xf32>
    %21 = tpu.matmul %0, %20, %cst_17 {dimension_numbers = #tpu.dot_dimension_numbers<[1], [0], [0], [1], [0, 0, 1, 1], [], []>} : vector<4x4xf32>, vector<4x128xf32>, vector<4x128xf32> -> vector<4x128xf32>
    %22 = vector.broadcast %1 : vector<4x1xf32> to vector<4x128xf32>
    %23 = arith.addf %21, %22 : vector<4x128xf32>
    %24 = vector.extract_strided_slice %4 {offsets = [0, 1, 0], sizes = [8, 1, 4], strides = [1, 1, 1]} : vector<8x2x4xf32> to vector<8x1x4xf32>
    %25 = vector.shape_cast %24 : vector<8x1x4xf32> to vector<8x4xf32>
    %cst_18 = arith.constant dense<0.000000e+00> : vector<4x128xf32>
    %26 = tpu.matmul %25, %3, %cst_18 {dimension_numbers = #tpu.dot_dimension_numbers<[0], [0], [1], [1], [0, 1, 1, 1], [], []>} : vector<8x4xf32>, vector<8x128xf32>, vector<4x128xf32> -> vector<4x128xf32>
    %27 = arith.mulf %26, %2 : vector<4x128xf32>
    %cst_19 = arith.constant 1.000000e+00 : f32
    %28 = vector.broadcast %cst_19 : f32 to vector<4x128xf32>
    %29 = arith.addf %28, %27 : vector<4x128xf32>
    %30 = arith.mulf %23, %29 : vector<4x128xf32>
    %31 = vector.shape_cast %17 : vector<4x128xf32> to vector<1x4x128xf32>
    %32 = vector.shape_cast %30 : vector<4x128xf32> to vector<1x4x128xf32>
    %33 = tpu.concatenate %31, %32 in 0 : vector<1x4x128xf32>, vector<1x4x128xf32> -> vector<2x4x128xf32>
    %c0_20 = arith.constant 0 : index
    %c0_21 = arith.constant 0 : index
    %c0_22 = arith.constant 0 : index
    %34 = vector.load %arg7[%c0_20, %c0_21, %c0_22] : memref<2x4x128xf32, #tpu.memory_space<vmem>>, vector<2x4x128xf32>
    tpu.vector_store %arg7[%c0_20, %c0_21, %c0_22], %33 {strides = array<i32>} : memref<2x4x128xf32, #tpu.memory_space<vmem>>, vector<2x4x128xf32>,
    return
  }
  func.func @transform_0(%arg0: i32) -> (i32, i32, i32) {
    %c0_i32 = arith.constant 0 : i32
    %c0_i32_0 = arith.constant 0 : i32
    %c0_i32_1 = arith.constant 0 : i32
    return %c0_i32, %c0_i32_0, %arg0 : i32, i32, i32
  }
  func.func @transform_1(%arg0: i32) -> (i32, i32) {
    %c0_i32 = arith.constant 0 : i32
    %c0_i32_0 = arith.constant 0 : i32
    %c0_i32_1 = arith.constant 0 : i32
    return %c0_i32, %c0_i32_0 : i32, i32
  }
  func.func @transform_2(%arg0: i32) -> (i32, i32) {
    %c0_i32 = arith.constant 0 : i32
    %c0_i32_0 = arith.constant 0 : i32
    %c0_i32_1 = arith.constant 0 : i32
    return %c0_i32, %c0_i32_0 : i32, i32
  }
  func.func @transform_3(%arg0: i32) -> (i32, i32, i32) {
    %c0_i32 = arith.constant 0 : i32
    %c0_i32_0 = arith.constant 0 : i32
    %c0_i32_1 = arith.constant 0 : i32
    return %arg0, %c0_i32, %c0_i32_0 : i32, i32, i32
  }
  func.func @transform_4(%arg0: i32) -> (i32, i32) {
    %c0_i32 = arith.constant 0 : i32
    %c0_i32_0 = arith.constant 0 : i32
    return %c0_i32, %arg0 : i32, i32
  }
  func.func @transform_5(%arg0: i32) -> (i32, i32) {
    %c0_i32 = arith.constant 0 : i32
    %c0_i32_0 = arith.constant 0 : i32
    %c0_i32_1 = arith.constant 0 : i32
    return %c0_i32, %c0_i32_0 : i32, i32
  }
  func.func @transform_6(%arg0: i32) -> (i32, i32, i32) {
    %c0_i32 = arith.constant 0 : i32
    %c0_i32_0 = arith.constant 0 : i32
    %c0_i32_1 = arith.constant 0 : i32
    return %c0_i32, %c0_i32_0, %arg0 : i32, i32, i32
  }
}

</mosaic_0001>

<bundles_post_ra>
// kernel: mute_forward.3
= control target key start
LH: loop header
LB: loop body
LE: loop exit
PB: predicated region body
PF: predicated region fallthrough
CT: control target
= control target key end

     0   :  { %s806_s21 = smov 0   ;;  %s808_s22 = smov 0   ;;  %s890_s0 = inlined_call_operand.vmem [shape: bf16[2,4,256], index: 0, kind: input, shape index: {}]   ;;  %s891_s1 = inlined_call_operand.vmem [shape: f32[4,4], index: 1, kind: input, shape index: {}]   ;;  %s892_s2 = inlined_call_operand.vmem [shape: f32[4,1], index: 2, kind: input, shape index: {}]   ;;  %s893_s3 = inlined_call_operand.vmem [shape: f32[16,2,4], index: 3, kind: input, shape index: {}]   ;;  %s894_s4 = inlined_call_operand.vmem [shape: f32[4,256], index: 4, kind: input, shape index: {}]   ;;  %s895_s5 = inlined_call_operand.vmem [shape: f32[8,128], index: 5, kind: input, shape index: {}]   ;;  %s896_s6 = inlined_call_operand.vmem [shape: f32[2,4,256], index: 6, kind: output, shape index: {}]  }
   0x1   :  { %s810_s23 = smov 0  }
   0x2 LB: > { %s819_s24 = sadd.s32 4294967295, %s768_s23   ;;  %s821_s25 = sadd.s32 1, %s768_s23   ;;  %s768_s23 = sphi %s810_s23, %s900_s23   ;;  %s764_s22 = sphi %s808_s22, %s899_s22   ;;  %s760_s21 = sphi %s806_s21, %s898_s21  }
   0x3   : > { %s20_s26 = ssub.s32 %s768_s23, %s821_s25  ;;  %s23_s27 = sadd.s32 1, %s764_s22 }
   0x4   : > { %p21_p0 = scmp.eq.s32.totalorder %s20_s26, 0  ;;  %p30_p1 = scmp.ne.s32.totalorder %s764_s22, %s760_s21 }
   0x5   : > { %p31_p2 = scmp.eq.s32.totalorder %s768_s23, 0  ;;  %p175_p3 = scmp.eq.s32.totalorder %s819_s24, 1 }
   0x6   : > { %s829_s28 = scalar_select %p21_p0, %s764_s22, %s23_s27  }
   0x7   : > { %p32_p4 = por %p31_p2, %p30_p1  ;;  %p831_p5 = por %p175_p3, %p30_p1 }
   0x8   : > { %p698_p6 = scmp.ge.s32.totalorder %s768_s23, 2 }
   0xa   : > { %206 = sbr.rel (%p698_p6) target bundleno = 21 (0x15), region = 28 }
   0xf   : > { %209 = sbr.rel (!%p32_p4) target bundleno = 21 (0x15), region = 32  ;;  %s211_s30 = sand.u32 (%p32_p4), 1, %s764_s22  }
  0x10   : > { %s700_s7 = sshll.u32 (%p32_p4), %s768_s23, 1  ;;  %s699_s8 = sshll.u32 (%p32_p4), %s211_s30, 2 }
  0x11   : > { %s215_s11 = scalar_lea.vmem (%p32_p4), %s890_s0, %s700_s7  ;;  %s213_s12 = scalar_lea.vmem (%p32_p4), [#allocation2], %s699_s8 }
  0x12   : > { %v232_v0 = vld [vmem:[%s215_s11] sm:$0x3] (%p32_p4)  ;;  %v234_v1 = vld [vmem:[%s215_s11 + $0x4] sm:$0x3] (%p32_p4) }
  0x13   : > { %233 = vst [vmem:[%s213_s12] sm:$0x3] (%p32_p4), %v232_v0 }
  0x14   : > { %235 = vst [vmem:[%s213_s12 + $0x2] sm:$0x3] %v234_v1 }
  0x15 PF: > { %p701_p7 = scmp.ge.s32.totalorder %s768_s23, 1  ;;  %p270_p8 = scmp.lt.s32.totalorder %s768_s23, 3 }
  0x17   : > { %p271_p9 = pnand %p701_p7, %p270_p8 }
  0x18   : > { %s704_s13 = sshll.u32 (!%p271_p9), %s819_s24, 3  ;;  %s277_s20 = sand.u32 (!%p271_p9), 1, %s760_s21  }
  0x19   : > { %274 = sbr.rel (%p271_p9) target bundleno = 358 (0x166), region = 74  ;;  %p315_p10 = scmp.lt.s32.totalorder (!%p271_p9), %s704_s13, 15 }
  0x1a   : > { %s702_s23 = sshll.u32 (!%p271_p9), %s277_s20, 2  ;;  %p320_p11 = scmp.lt.s32.totalorder (!%p271_p9), %s819_s24, 1 }
  0x1b   : > { %s279_s26 = scalar_lea.vmem (!%p271_p9), [#allocation2], %s702_s23  ;;  %s703_s14 = sshll.u32 (!%p271_p9), %s277_s20, 3 }
  0x1c   : > { %s313_s15 = scalar_lea.vmem (!%p271_p9), [#allocation3], %s703_s14 }
  0x1e   : > { %v327_v2 = vld [vmem:[%s895_s5] sm:$0xff]  ;;  %s902_s13 = smov (!%p315_p10, %s704_s13), 15  ;;  %vm380_vm0 = vcmask 1041409   ;;  %vm383_vm1 = vcmask 1042434   ;;  %vm386_vm2 = vcmask 1043459   ;;  %vm389_vm3 = vcmask 1044484  }
  0x1f   : > { %551 = vmatpush.msra.mxu3 %v327_v2  ;;  %452 = vmatpush.msra.mxu1 %v327_v2  ;;  %s705_s16 = sshll.u32 %s902_s13, 1  ;;  %vm392_vm4 = vcmask 1045509   ;;  %vm395_vm5 = vcmask 1046534   ;;  %vm398_vm6 = vcmask 1047559   ;;  %v710_v39 = vld [vmem:[%s279_s26 + $0x2] sm:$0x3] }
  0x20   : > { %s318_s19 = scalar_lea.vmem %s893_s3, %s705_s16  ;;  %v462_v40 = vunpack.c.l.bf16 %v710_v39  ;;  %vm347_vm7 = vcmask 1043456   ;;  %v324_v41 = vld [vmem:[%s891_s1] sm:$0xf]  ;;  %vm343_vm8 = vcmask 31744   ;;  %v770_v45 = vmov 0   ;;  %s715_s16 = sshll.u32 (%p831_p5), %s819_s24, 2 }
  0x21   : > { %v328_v3 = vld [vmem:[%s318_s19] sm:$0x3]  ;;  %v329_v4 = vld [vmem:[%s318_s19 + $0x2] sm:$0x3]  ;;  %v330_v5 = vld [vmem:[%s318_s19 + $0x4] sm:$0x3]  ;;  %744 = vset.pattern.permute.xlu1 %v770_v45  ;;  %s569_s18 = scalar_lea.vmem (%p831_p5), %s896_s6, %s715_s16 }
  0x22   : > { %v331_v6 = vld [vmem:[%s318_s19 + $0x6] sm:$0x3]  ;;  %v332_v7 = vld [vmem:[%s318_s19 + $0x8] sm:$0x3]  ;;  %v333_v8 = vld [vmem:[%s318_s19 + $0xa] sm:$0x3]  ;;  %711 = vmatpush.msk.msra.mxu2 %vm347_vm7, %v462_v40 }
  0x23   : > { %v334_v9 = vld [vmem:[%s318_s19 + $0xc] sm:$0x3]  ;;  %v379_v10 = vrot.slane %v329_v4, 7  ;;  %v486_v11 = vrot.slane %v328_v3, 1  ;;  %v335_v12 = vld [vmem:[%s318_s19 + $0xe] sm:$0x3]  ;;  %712 = vmatmul.msk.f32.vlgmr.msra.gmra.mxu2 %vm343_vm8, %v324_v41 }
  0x24   : > { %v488_v13 = vrot.slane %v330_v5, 7  ;;  %v490_v14 = vrot.slane %v331_v6, 6  ;;  %v492_v15 = vrot.slane %v332_v7, 5  ;;  %v494_v17 = vrot.slane %v333_v8, 4  ;;  %v336_v42 = vld [vmem:[%s279_s26] sm:$0x3] }
  0x25   : > { %v487_v16 = vsel %vm380_vm0, %v329_v4, %v486_v11  ;;  %v496_v18 = vrot.slane %v334_v9, 3  ;;  %v381_v19 = vsel %vm380_vm0, %v379_v10, %v328_v3  ;;  %v382_v21 = vrot.slane %v330_v5, 6  ;;  %v325_v44 = vld [vmem:[%s892_s2] sm:$0xf]  ;;  %s321_s9 = scalar_select %p320_p11, %s819_s24, 1 }
  0x26   : > { %v489_v20 = vsel %vm383_vm1, %v488_v13, %v487_v16  ;;  %v385_v22 = vrot.slane %v331_v6, 5  ;;  %v388_v23 = vrot.slane %v332_v7, 4  ;;  %v498_v25 = vrot.slane %v335_v12, 2  ;;  %340 = vperm.xlu1 %744, %v325_v44  }
  0x27   : > { %v491_v24 = vsel %vm386_vm2, %v490_v14, %v489_v20  ;;  %v391_v26 = vrot.slane %v333_v8, 3  ;;  %v384_v28 = vsel %vm383_vm1, %v382_v21, %v381_v19  ;;  %v394_v33 = vrot.slane %v334_v9, 2  ;;  %s706_s10 = sshll.u32 %s321_s9, 2 }
  0x28   : > { %v493_v27 = vsel %vm389_vm3, %v492_v15, %v491_v24  ;;  %v387_v30 = vsel %vm386_vm2, %v385_v22, %v384_v28  ;;  %v397_v36 = vrot.slane %v335_v12, 1  ;;  %v337_v43 = vunpack.c.l.bf16 %v336_v42  ;;  %s323_s13 = scalar_lea.vmem %s894_s4, %s706_s10 }
  0x29   : > { %v495_v29 = vsel %vm392_vm4, %v494_v17, %v493_v27  ;;  %v390_v32 = vsel %vm389_vm3, %v388_v23, %v387_v30  ;;  %vm433_vm9 = vcmask 64512   ;;  %v326_v48 = vld [vmem:[%s323_s13] sm:$0xf] }
  0x2a   : > { %v497_v31 = vsel %vm395_vm5, %v496_v18, %v495_v29  ;;  %v393_v35 = vsel %vm392_vm4, %v391_v26, %v390_v32  ;;  %707 = vmatpush.msk.msra.mxu0 %vm347_vm7, %v337_v43 }
  0x2b   : > { %v499_v34 = vsel %vm398_vm6, %v498_v25, %v497_v31  ;;  %v396_v37 = vsel %vm395_vm5, %v394_v33, %v393_v35  ;;  %708 = vmatmul.msk.f32.vlgmr.msra.gmra.mxu0 %vm343_vm8, %v324_v41 }
  0x2c   : > { %501 = vxpose.xlu0.b32.start.end [1/1] (short) (narrow) %v499_v34, 8  ;;  %v399_v38 = vsel %vm398_vm6, %v397_v36, %v396_v37 }
  0x34   : > { %401 = vxpose.xlu0.b32.start.end [1/1] (short) (narrow) %v399_v38, 8 }
  0x98   : > { %v341_v49 = vpop.permute.xlu1 %340 }
  0x9b   : > { %745 = vset.pattern.permute.xlu0 %v770_v45 }
  0xa6   : > { %v483_v50 = vpop.f32.mrf.mxu2 }
  0xa7   : > { %v484_v54 = vadd.f32 %v483_v50, %v341_v49 }
  0xa8   : > { %v368_v52 = vpop.f32.mrf.mxu0 }
  0xa9   : > { %v369_v58 = vadd.f32 %v368_v52, %v341_v49 }
  0xd0   : > { %v517_v46 = vpop.trf.xlu0 }
  0xd1   : > { %713 = vmatmul.msk.f32.vlgmr.msra.gmra.mxu3 %vm433_vm9, %v517_v46 }
  0xd8   : > { %v417_v47 = vpop.trf.xlu0 }
  0xd9   : > { %709 = vmatmul.msk.f32.vlgmr.msra.gmra.mxu1 %vm433_vm9, %v417_v47 }
 0x154   : > { %v553_v51 = vpop.f32.mrf.mxu3 }
 0x155   : > { %v556_v53 = vmul.f32 %v553_v51, %v326_v48 }
 0x156   : > { %v454_v55 = vpop.f32.mrf.mxu1 }
 0x157   : > { %v557_v56 = vadd.f32 1.0, %v556_v53  ;;  %v457_v57 = vmul.f32 %v454_v55, %v326_v48 }
 0x159   : > { %v458_v59 = vadd.f32 1.0, %v457_v57  ;;  %v558_v60 = vmul.f32 %v557_v56, %v484_v54  ;;  %567 = sbr.rel (!%p831_p5) target bundleno = 358 (0x166), region = 82 }
 0x15b   : > { %560 = vst [vmem:[%s313_s15 + $0x4] sm:$0xf] %v558_v60  ;;  %v459_v61 = vmul.f32 %v458_v59, %v369_v58 }
 0x15d   : > { %559 = vst [vmem:[%s313_s15] sm:$0xf] %v459_v61 }
 0x162   : > { %v588_v63 = vld [vmem:[%s313_s15 + $0x4] sm:$0xf] }
 0x163   : > { %589 = vst [vmem:[%s569_s18 + $0x8] sm:$0xf] %v588_v63 }
 0x164   : > { %v586_v62 = vld [vmem:[%s313_s15] sm:$0xf] }
 0x165   : > { %587 = vst [vmem:[%s569_s18] sm:$0xf] %v586_v62 }
 0x166 PF: > { %p13_p12 = scmp.ge.s32.totalorder %s821_s25, 4   ;;  %s898_s21 = smov %s764_s22 }
 0x167   : > { %s899_s22 = smov %s829_s28  ;;  %s900_s23 = smov %s821_s25 }
 0x168   :  { %15 = sbr.rel (!%p13_p12) target bundleno = 2 (0x2), region = 161 }

// kernel: mute_forward.2
= control target key start
LH: loop header
LB: loop body
LE: loop exit
PB: predicated region body
PF: predicated region fallthrough
CT: control target
= control target key end

     0   :  { %s1434_s24 = smov 0   ;;  %s1436_s25 = smov 0   ;;  %s1777_s0 = inlined_call_operand.vmem [shape: bf16[2,4,256], index: 0, kind: input, shape index: {}, may-alias: {0,1}]   ;;  %s1778_s1 = inlined_call_operand.vmem [shape: bf16[2,4,256], index: 1, kind: input, shape index: {}, may-alias: {0,1}]   ;;  %s1779_s2 = inlined_call_operand.vmem [shape: bf16[4,4], index: 2, kind: input, shape index: {}]   ;;  %s1780_s3 = inlined_call_operand.vmem [shape: f32[4,1], index: 3, kind: input, shape index: {}]   ;;  %s1781_s4 = inlined_call_operand.vmem [shape: bf16[4,4], index: 4, kind: input, shape index: {}]   ;;  %s1782_s5 = inlined_call_operand.vmem [shape: f32[4,1], index: 5, kind: input, shape index: {}]   ;;  %s1783_s6 = inlined_call_operand.vmem [shape: f32[2,256], index: 6, kind: output, shape index: {0}]   ;;  %s1784_s7 = inlined_call_operand.vmem [shape: f32[4,256], index: 7, kind: output, shape index: {1}]  }
   0x1   :  { %s1438_s26 = smov 0   ;;  %s1440_s27 = smov 0  }
   0x2   :  { %s1442_s28 = smov 0   ;;  %s1444_s29 = smov 0  }
   0x3   :  { %s1446_s30 = smov 0   ;;  %s1448_s8 = smov 0  }
   0x4   :  { %s1450_s9 = smov 0  }
   0x5 LB: > { %1788 = sst [smem:[#allocation5_spill]] %s1386_s8  ;;  %s27_s10 = sadd.s32 1, %s1382_s30  ;;  %s1390_s9 = sphi %s1450_s9, %s18_s9   ;;  %s1386_s8 = sphi %s1448_s8, %s1795_s8   ;;  %s1382_s30 = sphi %s1446_s30, %s1801_s30   ;;  %s1378_s29 = sphi %s1444_s29, %s1793_s29   ;;  %s1374_s28 = sphi %s1442_s28, %s1800_s28   ;;  %s1370_s27 = sphi %s1440_s27, %s1799_s27   ;;  %s1366_s26 = sphi %s1438_s26, %s1798_s26   ;;  %s1362_s25 = sphi %s1436_s25, %s1797_s25   ;;  %s1358_s24 = sphi %s1434_s24, %s1796_s24  }
   0x6   : > { %s30_s11 = sadd.s32 1, %s1386_s8  ;;  %p28_p0 = scmp.ge.s32.totalorder %s27_s10, 2 }
   0x7   : > { %s37_s12 = sadd.s32 1, %s1370_s27  ;;  %p44_p1 = scmp.ne.s32.totalorder %s1370_s27, %s1366_s26 }
   0x8   : > { %p45_p2 = scmp.eq.s32.totalorder %s1390_s9, 0  ;;  %s1803_s10 = smov (%p28_p0, %s27_s10), 0 }
   0x9   : > { %1789 = sst [smem:[#allocation6_spill]] %s1803_s10  ;;  %s1805_s11 = smov (!%p28_p0, %s30_s11), %s1386_s8 }
   0xa   : > { %p1488_p3 = por %p45_p2, %p44_p1  ;;  %s60_s14 = ssub.s32 %s1382_s30, %s1803_s10 }
   0xb   : > { %p32_p4 = scmp.ge.s32.totalorder %s1805_s11, 2  ;;  %p61_p5 = scmp.eq.s32.totalorder %s60_s14, 0 }
   0xc   : > { %s63_s15 = sadd.s32 1, %s1362_s25  ;;  %p70_p6 = scmp.ne.s32.totalorder %s1362_s25, %s1358_s24 }
   0xd   : > { %s1807_s11 = smov (%p32_p4, %s1805_s11), 0  ;;  %p1092_p9 = scmp.ge.s32.totalorder %s1390_s9, 4 }
   0xe   : > { %1791 = sst [smem:[#allocation7_spill]] %s1807_s11  ;;  %s34_s17 = ssub.s32 %s1386_s8, %s1807_s11 }
   0xf   : > { %s1500_s16 = scalar_select %p61_p5, %s1362_s25, %s63_s15  }
  0x10   : > { %p1504_p7 = por %p70_p6, %p45_p2  ;;  %p35_p8 = scmp.eq.s32.totalorder %s34_s17, 0 }
  0x11   : > { %244 = sbr.rel (%p1092_p9) target bundleno = 34 (0x22), region = 32 }
  0x12   : > { %s1509_s19 = scalar_select %p35_p8, %s1370_s27, %s37_s12  }
  0x16   : > { %247 = sbr.rel (!%p1488_p3) target bundleno = 28 (0x1c), region = 36  ;;  %s249_s20 = sand.u32 (%p1488_p3), 1, %s1370_s27  }
  0x17   : > { %s1094_s21 = sshll.u32 (%p1488_p3), %s1386_s8, 1  ;;  %s1093_s22 = sshll.u32 (%p1488_p3), %s249_s20, 2 }
  0x18   : > { %s253_s15 = scalar_lea.vmem (%p1488_p3), %s1777_s0, %s1094_s21  ;;  %s251_s17 = scalar_lea.vmem (%p1488_p3), [#allocation3], %s1093_s22 }
  0x19   : > { %v270_v0 = vld [vmem:[%s253_s15] sm:$0x3] (%p1488_p3)  ;;  %v272_v1 = vld [vmem:[%s253_s15 + $0x4] sm:$0x3] (%p1488_p3) }
  0x1a   : > { %271 = vst [vmem:[%s251_s17] sm:$0x3] (%p1488_p3), %v270_v0 }
  0x1b   : > { %273 = vst [vmem:[%s251_s17 + $0x2] sm:$0x3] %v272_v1 }
  0x1c PF: > { %293 = sbr.rel (!%p1504_p7) target bundleno = 34 (0x22), region = 70  ;;  %s295_s12 = sand.u32 (%p1504_p7), 1, %s1362_s25  }
  0x1d   : > { %s1096_s13 = sshll.u32 (%p1504_p7), %s1382_s30, 1  ;;  %s1095_s11 = sshll.u32 (%p1504_p7), %s295_s12, 2 }
  0x1e   : > { %s299_s8 = scalar_lea.vmem (%p1504_p7), %s1778_s1, %s1096_s13  ;;  %s297_s21 = scalar_lea.vmem (%p1504_p7), [#allocation4], %s1095_s11 }
  0x1f   : > { %v316_v2 = vld [vmem:[%s299_s8] sm:$0x3] (%p1504_p7)  ;;  %v318_v3 = vld [vmem:[%s299_s8 + $0x4] sm:$0x3] (%p1504_p7) }
  0x20   : > { %317 = vst [vmem:[%s297_s21] sm:$0x3] (%p1504_p7), %v316_v2 }
  0x21   : > { %319 = vst [vmem:[%s297_s21 + $0x2] sm:$0x3] %v318_v3 }
  0x22 PF: > { %p1097_p10 = scmp.ge.s32.totalorder %s1390_s9, 1  ;;  %p338_p11 = scmp.lt.s32.totalorder %s1390_s9, 5 }
  0x24   : > { %p339_p12 = pnand %p1097_p10, %p338_p11 }
  0x25   : > { %s345_s10 = sand.u32 (!%p339_p12), 1, %s1366_s26   ;;  %s352_s18 = sand.u32 (!%p339_p12), 1, %s1358_s24  }
  0x26   : > { %342 = sbr.rel (%p339_p12) target bundleno = 813 (0x32d), region = 104  ;;  %s1098_s8 = sshll.u32 (!%p339_p12), %s345_s10, 2 }
  0x27   : > { %s1530_s11 = sshll.u32 (!%p339_p12), %s352_s18, 2  ;;  %p390_p13 = scmp.lt.s32.totalorder (!%p339_p12), %s1378_s29, 1 }
  0x28   : > { %p394_p0 = scmp.lt.s32.totalorder (!%p339_p12), %s1374_s28, 1  ;;  %s347_s24 = scalar_lea.vmem (!%p339_p12), [#allocation3], %s1098_s8 }
  0x29   : > { %s354_s21 = scalar_lea.vmem (!%p339_p12), [#allocation4], %s1530_s11  ;;  %p1102_p1 = scmp.ne.s32.totalorder (!%p339_p12), %s1374_s28, 0 }
  0x2b   : > { %s1809_s29 = smov (!%p390_p13, %s1378_s29), 1  ;;  %402 = sbr.rel (%p1102_p1) target bundleno = 187 (0xbb), region = 116 }
  0x2c   : > { %s395_s22 = scalar_select %p394_p0, %s1374_s28, 1 }
  0x2d   : > { %s1100_s23 = sshll.u32 %s1809_s29, 1 }
  0x2e   : > { %s1539_s17 = scalar_lea.vmem %s1783_s6, %s1100_s23  ;;  %s1101_s12 = sshll.u32 %s395_s22, 2 }
  0x2f   : > { %s1544_s26 = scalar_lea.vmem %s1784_s7, %s1101_s12 }
  0x30   : > { %v404_v4 = vld [vmem:[%s347_s24] sm:$0x3]  ;;  %vm409_vm0 = vcmask 1041408   ;;  %v1104_v5 = vld [vmem:[%s347_s24 + $0x2] sm:$0x3]  ;;  %vm405_vm1 = vcmask 31744  }
  0x31   : > { %v411_v6 = vsel %vm409_vm0, %v404_v4, 0  ;;  %v429_v7 = vsel %vm409_vm0, %v1104_v5, 0  ;;  %v403_v8 = vld [vmem:[%s1781_s4] sm:$0x3]  ;;  %v1392_v10 = vmov 0  }
  0x32   : > { %420 = vmatpush.bf16.msra.mxu0 %v411_v6  ;;  %438 = vmatpush.bf16.msra.mxu1 %v429_v7  ;;  %v444_v9 = vld [vmem:[%s1782_s5] sm:$0xf] }
  0x33   : > { %1205 = vset.pattern.permute.xlu0 %v1392_v10 }
  0x34   : > { %447 = vperm.xlu0 %1205, %v444_v9  }
  0x35   : > { %1103 = vmatmul.msk.bf16.vlgmr.msra.gmra.mxu0 %vm405_vm1, %v403_v8  ;;  %1105 = vmatmul.msk.bf16.vlgmr.msra.gmra.mxu1 %vm405_vm1, %v403_v8 }
  0xa6   : > { %v448_v11 = vpop.permute.xlu0 %447 }
  0xb2   : > { %v422_v12 = vpop.f32.mrf.mxu0  ;;  %v440_v13 = vpop.f32.mrf.mxu1 }
  0xb3   : > { %v450_v14 = vadd.f32 %v448_v11, %v422_v12  ;;  %v451_v15 = vadd.f32 %v448_v11, %v440_v13 }
  0xb5   : > { %v452_v16 = vpack.c.bf16 %v450_v14, %v450_v14  ;;  %v453_v17 = vpack.c.bf16 %v451_v15, %v451_v15 }
  0xb7   : > { %454 = vst [vmem:[#allocation2] sm:$0x3] %v452_v16 }
  0xb8   : > { %455 = vst [vmem:[#allocation2 + $0x2] sm:$0x3] %v453_v17 }
  0xba   : > { %v424_v18 = vpop.f32.mrf.mxu0  ;;  %v442_v19 = vpop.f32.mrf.mxu1 }
  0xbb PF: > { %v457_v20 = vld [vmem:[%s354_s21] sm:$0x3]  ;;  %vm462_vm2 = vcmask 1041408   ;;  %v1107_v21 = vld [vmem:[%s354_s21 + $0x2] sm:$0x3]  ;;  %vm458_vm3 = vcmask 31744  }
  0xbc   : > { %v464_v22 = vsel %vm462_vm2, %v457_v20, 0  ;;  %v482_v23 = vsel %vm462_vm2, %v1107_v21, 0  ;;  %v456_v24 = vld [vmem:[%s1779_s2] sm:$0x3]  ;;  %v1393_v26 = vmov 0   ;;  %vm505_vm4 = vcmask 1043456  }
  0xbd   : > { %473 = vmatpush.bf16.msra.mxu0 %v464_v22  ;;  %491 = vmatpush.bf16.msra.mxu1 %v482_v23  ;;  %v497_v25 = vld [vmem:[%s1780_s3] sm:$0xf] }
  0xbe   : > { %1206 = vset.pattern.permute.xlu0 %v1393_v26  ;;  %v512_v27 = vld [vmem:[#allocation2] sm:$0x3] }
  0xbf   : > { %500 = vperm.xlu0 %1206, %v497_v25   ;;  %v554_v28 = vsel %vm462_vm2, %v512_v27, 0  ;;  %v606_v41 = vld [vmem:[#allocation2 + $0x2] sm:$0x3] }
  0xc0   : > { %1106 = vmatmul.msk.bf16.vlgmr.msra.gmra.mxu0 %vm458_vm3, %v456_v24  ;;  %1108 = vmatmul.msk.bf16.vlgmr.msra.gmra.mxu1 %vm458_vm3, %v456_v24  ;;  %v648_v42 = vsel %vm462_vm2, %v606_v41, 0 }
  0xc1   : > { %563 = vmatpush.bf16.msrb.mxu0 %v554_v28  ;;  %1129 = vmatpush.bf16.msra.mxu2 %v554_v28 }
  0xc2   : > { %657 = vmatpush.bf16.msrb.mxu1 %v648_v42  ;;  %1130 = vmatpush.bf16.msra.mxu3 %v648_v42 }
 0x131   : > { %v501_v29 = vpop.permute.xlu0 %500 }
 0x13d   : > { %v475_v30 = vpop.f32.mrf.mxu0  ;;  %v493_v31 = vpop.f32.mrf.mxu1 }
 0x13e   : > { %v503_v32 = vadd.f32 %v501_v29, %v475_v30  ;;  %v504_v33 = vadd.f32 %v501_v29, %v493_v31 }
 0x140   : > { %v506_v34 = vsel %vm505_vm4, %v503_v32, -inf  ;;  %v510_v35 = vpack.c.bf16 %v503_v32, %v503_v32  ;;  %v507_v36 = vsel %vm505_vm4, %v504_v33, -inf  ;;  %v511_v37 = vpack.c.bf16 %v504_v33, %v504_v33 }
 0x141   : > { %v508_v38 = vmax.f32 %v506_v34, %v507_v36 }
 0x142   : > { %1207 = vxpose.binary.xlu0.c.b16.start.end [1/2] (short) %v511_v37, %v510_v35, 128 }
 0x143   : > { %509 = vst [vmem:[%s1544_s26] sm:$0xf] %v508_v38 }
 0x145   : > { %v477_v39 = vpop.f32.mrf.mxu0  ;;  %v495_v40 = vpop.f32.mrf.mxu1 }
 0x1ee   : > { %v1208_v43 = vpop.trf.xlu0 }
 0x1ef   : > { %1109 = vmatmul.msk.bf16.vlgmr.msrb.gmra.mxu0 %vm458_vm3, %v1208_v43 }
 0x1f6   : > { %v1209_v44 = vpop.trf.xlu0 }
 0x1f7   : > { %1117 = vmatmul.msk.bf16.vlgmr.msrb.gmra.mxu1 %vm458_vm3, %v1209_v44 }
 0x1fe   : > { %v1210_v45 = vpop.trf.xlu0 }
 0x1ff   : > { %1110 = vmatmul.msk.bf16.gmra.mxu0 %vm458_vm3, %v1210_v45 }
 0x206   : > { %v1211_v46 = vpop.trf.xlu0 }
 0x207   : > { %1118 = vmatmul.msk.bf16.gmra.mxu1 %vm458_vm3, %v1211_v46 }
 0x20e   : > { %v1212_v47 = vpop.trf.xlu0 }
 0x20f   : > { %1111 = vmatmul.msk.bf16.gmra.mxu0 %vm458_vm3, %v1212_v47 }
 0x216   : > { %v1213_v48 = vpop.trf.xlu0 }
 0x217   : > { %1119 = vmatmul.msk.bf16.gmra.mxu1 %vm458_vm3, %v1213_v48 }
 0x21e   : > { %v1214_v49 = vpop.trf.xlu0 }
 0x21f   : > { %1112 = vmatmul.msk.bf16.vlgmr.msra.gmra.mxu2 %vm458_vm3, %v1214_v49 }
 0x226   : > { %v1215_v50 = vpop.trf.xlu0 }
 0x227   : > { %1120 = vmatmul.msk.bf16.vlgmr.msra.gmra.mxu3 %vm458_vm3, %v1215_v50 }
 0x22e   : > { %v1216_v51 = vpop.trf.xlu0 }
 0x22f   : > { %1113 = vmatmul.msk.bf16.gmra.mxu2 %vm458_vm3, %v1216_v51 }
 0x236   : > { %v1217_v52 = vpop.trf.xlu0 }
 0x237   : > { %1121 = vmatmul.msk.bf16.gmra.mxu3 %vm458_vm3, %v1217_v52 }
 0x23e   : > { %v1218_v53 = vpop.trf.xlu0 }
 0x23f   : > { %1114 = vmatmul.msk.bf16.gmra.mxu2 %vm458_vm3, %v1218_v53 }
 0x246   : > { %v1219_v54 = vpop.trf.xlu0 }
 0x247   : > { %1122 = vmatmul.msk.bf16.gmra.mxu3 %vm458_vm3, %v1219_v54 }
 0x24e   : > { %v1220_v55 = vpop.trf.xlu0 }
 0x24f   : > { %1115 = vmatmul.msk.bf16.gmra.mxu2 %vm458_vm3, %v1220_v55 }
 0x256   : > { %v1221_v56 = vpop.trf.xlu0 }
 0x257   : > { %1123 = vmatmul.msk.bf16.gmra.mxu3 %vm458_vm3, %v1221_v56 }
 0x25e   : > { %v1222_v57 = vpop.trf.xlu0 }
 0x25f   : > { %1116 = vmatmul.msk.bf16.gmra.mxu2 %vm458_vm3, %v1222_v57 }
 0x266   : > { %v1223_v58 = vpop.trf.xlu0 }
 0x267   : > { %1124 = vmatmul.msk.bf16.gmra.mxu3 %vm458_vm3, %v1223_v58 }
 0x26c   : > { %v565_v60 = vpop.f32.mrf.mxu0 }
 0x26d   : > { %v699_v20 = vmul.f32 0.5, %v565_v60 }
 0x274   : > { %v659_v59 = vpop.f32.mrf.mxu1  ;;  %v567_v63 = vpop.f32.mrf.mxu0 }
 0x275   : > { %v715_v15 = vmul.f32 0.5, %v659_v59  ;;  %v700_v23 = vmul.f32 0.5, %v567_v63 }
 0x277   : > { %v731_v24 = vmax.f32 %v699_v20, %v715_v15 }
 0x279   : > { %v747_v28 = vsub.f32 %v699_v20, %v731_v24  ;;  %v763_v34 = vsub.f32 %v715_v15, %v731_v24 }
 0x27b   : > { %v779_v41 = vmul.f32 1.442695, %v747_v28  ;;  %v811_v44 = vmul.f32 1.442695, %v763_v34 }
 0x27c   : > { %v661_v62 = vpop.f32.mrf.mxu1  ;;  %v570_v12 = vpop.f32.mrf.mxu0 }
 0x27d   : > { %v716_v21 = vmul.f32 0.5, %v661_v62  ;;  %v701_v26 = vmul.f32 0.5, %v570_v12 }
 0x27f   : > { %v732_v27 = vmax.f32 %v700_v23, %v716_v21 }
 0x281   : > { %v748_v35 = vsub.f32 %v700_v23, %v732_v27  ;;  %v764_v39 = vsub.f32 %v716_v21, %v732_v27 }
 0x283   : > { %v781_v47 = vmul.f32 1.442695, %v748_v35  ;;  %v813_v48 = vmul.f32 1.442695, %v764_v39 }
 0x284   : > { %v664_v7 = vpop.f32.mrf.mxu1  ;;  %v572_v22 = vpop.f32.mrf.mxu0 }
 0x285   : > { %v717_v25 = vmul.f32 0.5, %v664_v7  ;;  %v702_v36 = vmul.f32 0.5, %v572_v22 }
 0x287   : > { %v733_v29 = vmax.f32 %v701_v26, %v717_v25 }
 0x289   : > { %v749_v42 = vsub.f32 %v701_v26, %v733_v29  ;;  %v765_v45 = vsub.f32 %v717_v25, %v733_v29 }
 0x28b   : > { %v783_v49 = vmul.f32 1.442695, %v749_v42  ;;  %v815_v53 = vmul.f32 1.442695, %v765_v45 }
 0x28c   : > { %v666_v18 = vpop.f32.mrf.mxu1  ;;  %v575_v46 = vpop.f32.mrf.mxu0 }
 0x28d   : > { %v718_v30 = vmul.f32 0.5, %v666_v18  ;;  %v703_v60 = vmul.f32 0.5, %v575_v46 }
 0x28f   : > { %v734_v43 = vmax.f32 %v702_v36, %v718_v30 }
 0x291   : > { %v750_v50 = vsub.f32 %v702_v36, %v734_v43  ;;  %v766_v54 = vsub.f32 %v718_v30, %v734_v43 }
 0x293   : > { %v785_v55 = vmul.f32 1.442695, %v750_v50  ;;  %v817_v57 = vmul.f32 1.442695, %v766_v54 }
 0x294   : > { %v669_v40 = vpop.f32.mrf.mxu1  ;;  %v577_v62 = vpop.f32.mrf.mxu0 }
 0x295   : > { %v719_v56 = vmul.f32 0.5, %v669_v40  ;;  %v704_v7 = vmul.f32 0.5, %v577_v62 }
 0x29c   : > { %v671_v58 = vpop.f32.mrf.mxu1 }
 0x2a2   : > { %v580_v61 = vpop.f32.mrf.mxu2 }
 0x2a3   : > { %v705_v2 = vmul.f32 0.5, %v580_v61 }
 0x2aa   : > { %v1589_v0 = vpop.f32.mrf.mxu2  ;;  %v674_v1 = vpop.f32.mrf.mxu3 }
 0x2ab   : > { %v721_v3 = vmul.f32 0.5, %v674_v1  ;;  %v735_v1 = vmax.f32 %v703_v60, %v719_v56  ;;  %v706_v20 = vmul.f32 0.5, %v1589_v0 }
 0x2ad   : > { %v737_v4 = vmax.f32 %v705_v2, %v721_v3 }
 0x2af   : > { %v753_v5 = vsub.f32 %v705_v2, %v737_v4  ;;  %v769_v6 = vsub.f32 %v721_v3, %v737_v4  ;;  %v720_v2 = vmul.f32 0.5, %v671_v58 }
 0x2b1   : > { %v791_v8 = vmul.f32 1.442695, %v753_v5  ;;  %v823_v9 = vmul.f32 1.442695, %v769_v6 }
 0x2b2   : > { %v1591_v10 = vpop.f32.mrf.mxu2  ;;  %v1593_v11 = vpop.f32.mrf.mxu3 }
 0x2b3   : > { %1224 = vpow2.f32 %v791_v8 }
 0x2b4   : > { %1226 = vpow2.f32 %v823_v9  ;;  %v722_v9 = vmul.f32 0.5, %v1593_v11  ;;  %v707_v11 = vmul.f32 0.5, %v1591_v10 }
 0x2b6   : > { %v738_v24 = vmax.f32 %v706_v20, %v722_v9 }
 0x2b8   : > { %v754_v35 = vsub.f32 %v706_v20, %v738_v24 }
 0x2b9   : > { %v1225_v13 = vpop.eup %1224 }
 0x2ba   : > { %v1227_v14 = vpop.eup %1226  ;;  %v1595_v16 = vpop.f32.mrf.mxu2 }
 0x2bb   : > { %v1597_v17 = vpop.f32.mrf.mxu3  ;;  %v849_v19 = vadd.f32 %v1227_v14, %v1225_v13  ;;  %v708_v0 = vmul.f32 0.5, %v1595_v16 }
 0x2bc   : > { %v723_v15 = vmul.f32 0.5, %v1597_v17 }
 0x2bd   : > { %1228 = vrcp.f32 %v849_v19  ;;  %v767_v19 = vsub.f32 %v719_v56, %v735_v1 }
 0x2be   : > { %1230 = vpow2.f32 %v779_v41  ;;  %v739_v27 = vmax.f32 %v707_v11, %v723_v15  ;;  %v770_v41 = vsub.f32 %v722_v9, %v738_v24 }
 0x2bf   : > { %1232 = vpow2.f32 %v811_v44  ;;  %v819_v29 = vmul.f32 1.442695, %v767_v19 }
 0x2c0   : > { %1234 = vpow2.f32 %v781_v47  ;;  %v755_v42 = vsub.f32 %v707_v11, %v739_v27  ;;  %v771_v47 = vsub.f32 %v723_v15, %v739_v27  ;;  %v825_v54 = vmul.f32 1.442695, %v770_v41 }
 0x2c1   : > { %1236 = vpow2.f32 %v813_v48 }
 0x2c2   : > { %v1599_v31 = vpop.f32.mrf.mxu2  ;;  %1238 = vpow2.f32 %v783_v49  ;;  %v793_v49 = vmul.f32 1.442695, %v754_v35 }
 0x2c3   : > { %v681_v32 = vpop.f32.mrf.mxu3  ;;  %v1229_v33 = vpop.eup %1228  ;;  %1240 = vpow2.f32 %v815_v53  ;;  %v709_v36 = vmul.f32 0.5, %v1599_v31 }
 0x2c4   : > { %v1601_v37 = vmul.f32 %v1229_v33, %v1225_v13  ;;  %v1603_v38 = vmul.f32 %v1229_v33, %v1227_v14  ;;  %v1607_v59 = vpop.eup %1230  ;;  %1242 = vpow2.f32 %v785_v55  ;;  %v751_v13 = vsub.f32 %v703_v60, %v735_v1 }
 0x2c5   : > { %v1609_v61 = vpop.eup %1232  ;;  %1244 = vpow2.f32 %v817_v57  ;;  %v736_v14 = vmax.f32 %v704_v7, %v720_v2  ;;  %v724_v25 = vmul.f32 0.5, %v681_v32  ;;  %v795_v55 = vmul.f32 1.442695, %v755_v42 }
 0x2c6   : > { %v1611_v63 = vpop.eup %1234  ;;  %v843_v12 = vadd.f32 %v1609_v61, %v1607_v59  ;;  %v787_v26 = vmul.f32 1.442695, %v751_v13 }
 0x2c7   : > { %v1613_v5 = vpop.eup %1236  ;;  %v752_v17 = vsub.f32 %v704_v7, %v736_v14  ;;  %v768_v34 = vsub.f32 %v720_v2, %v736_v14  ;;  %v740_v32 = vmax.f32 %v708_v0, %v724_v25  ;;  %v827_v2 = vmul.f32 1.442695, %v771_v47 }
 0x2c8   : > { %v1615_v6 = vpop.eup %1238  ;;  %v844_v18 = vadd.f32 %v1613_v5, %v1611_v63  ;;  %1246 = vrcp.f32 %v843_v12 }
 0x2c9   : > { %v1617_v8 = vpop.eup %1240  ;;  %v789_v40 = vmul.f32 1.442695, %v752_v17  ;;  %v821_v46 = vmul.f32 1.442695, %v768_v34  ;;  %v756_v31 = vsub.f32 %v708_v0, %v740_v32  ;;  %v772_v56 = vsub.f32 %v724_v25, %v740_v32 }
 0x2ca   : > { %v1605_v51 = vpop.f32.mrf.mxu2  ;;  %v1626_v21 = vpop.eup %1242  ;;  %v845_v22 = vadd.f32 %v1617_v8, %v1615_v6  ;;  %1248 = vrcp.f32 %v844_v18 }
 0x2cb   : > { %v684_v52 = vpop.f32.mrf.mxu3  ;;  %v1631_v23 = vpop.eup %1244  ;;  %v710_v43 = vmul.f32 0.5, %v1605_v51  ;;  %v829_v14 = vmul.f32 1.442695, %v772_v56 }
 0x2cc   : > { %v725_v30 = vmul.f32 0.5, %v684_v52  ;;  %1250 = vrcp.f32 %v845_v22  ;;  %v846_v33 = vadd.f32 %v1631_v23, %v1626_v21 }
 0x2cd   : > { %1252 = vpow2.f32 %v787_v26 }
 0x2ce   : > { %1254 = vpow2.f32 %v819_v29  ;;  %v741_v16 = vmax.f32 %v709_v36, %v725_v30  ;;  %v1638_v45 = vpop.eup %1246 }
 0x2cf   : > { %1256 = vrcp.f32 %v846_v33 }
 0x2d0   : > { %v1640_v48 = vpop.eup %1248  ;;  %1258 = vpow2.f32 %v789_v40  ;;  %v757_v57 = vsub.f32 %v709_v36, %v741_v16 }
 0x2d1   : > { %1260 = vpow2.f32 %v821_v46 }
 0x2d2   : > { %v595_v3 = vpop.f32.mrf.mxu2  ;;  %v1642_v53 = vpop.eup %1250  ;;  %1262 = vpow2.f32 %v793_v49  ;;  %v799_v19 = vmul.f32 1.442695, %v757_v57 }
 0x2d3   : > { %v686_v4 = vpop.f32.mrf.mxu3  ;;  %v711_v50 = vmul.f32 0.5, %v595_v3  ;;  %v1644_v1 = vpop.eup %1252  ;;  %v797_v3 = vmul.f32 1.442695, %v756_v31  ;;  %1264 = vpow2.f32 %v825_v54 }
 0x2d4   : > { %v726_v39 = vmul.f32 0.5, %v686_v4  ;;  %v773_v4 = vsub.f32 %v725_v30, %v741_v16  ;;  %v1646_v7 = vpop.eup %1254  ;;  %1266 = vpow2.f32 %v795_v55 }
 0x2d5   : > { %v1648_v13 = vpop.eup %1256  ;;  %1268 = vpow2.f32 %v827_v2  ;;  %v847_v49 = vadd.f32 %v1646_v7, %v1644_v1 }
 0x2d6   : > { %v742_v52 = vmax.f32 %v710_v43, %v726_v39  ;;  %v1650_v22 = vpop.eup %1258  ;;  %v831_v11 = vmul.f32 1.442695, %v773_v4  ;;  %1270 = vpow2.f32 %v797_v3 }
 0x2d7   : > { %v1652_v17 = vpop.eup %1260  ;;  %1272 = vpow2.f32 %v829_v14 }
 0x2d8   : > { %v758_v9 = vsub.f32 %v710_v43, %v742_v52  ;;  %v774_v15 = vsub.f32 %v726_v39, %v742_v52  ;;  %v1654_v0 = vpop.eup %1262  ;;  %1274 = vpow2.f32 %v799_v19  ;;  %v848_v54 = vadd.f32 %v1652_v17, %v1650_v22 }
 0x2d9   : > { %1276 = vpow2.f32 %v831_v11 }
 0x2da   : > { %v597_v10 = vpop.f32.mrf.mxu2  ;;  %v801_v25 = vmul.f32 1.442695, %v758_v9  ;;  %v833_v27 = vmul.f32 1.442695, %v774_v15 }
 0x2db   : > { %v689_v28 = vpop.f32.mrf.mxu3  ;;  %v712_v58 = vmul.f32 0.5, %v597_v10  ;;  %v1656_v10 = vpop.eup %1264 }
 0x2dc   : > { %v727_v44 = vmul.f32 0.5, %v689_v28  ;;  %v1658_v36 = vpop.eup %1266  ;;  %1278 = vpow2.f32 %v801_v25 }
 0x2dd   : > { %v1660_v40 = vpop.eup %1268  ;;  %1280 = vpow2.f32 %v833_v27 }
 0x2de   : > { %v743_v60 = vmax.f32 %v711_v50, %v727_v44  ;;  %v1662_v42 = vpop.eup %1270 }
 0x2e0   : > { %v759_v20 = vsub.f32 %v711_v50, %v743_v60  ;;  %v775_v24 = vsub.f32 %v727_v44, %v743_v60  ;;  %v1664_v44 = vpop.eup %1272 }
 0x2e1   : > { %v1666_v47 = vpop.eup %1274  ;;  %v852_v4 = vadd.f32 %v1664_v44, %v1662_v42 }
 0x2e2   : > { %v600_v18 = vpop.f32.mrf.mxu2  ;;  %v803_v30 = vmul.f32 1.442695, %v759_v20  ;;  %v835_v35 = vmul.f32 1.442695, %v775_v24  ;;  %v1670_v52 = vpop.eup %1276 }
 0x2e3   : > { %v691_v51 = vpop.f32.mrf.mxu3  ;;  %v713_v33 = vmul.f32 0.5, %v600_v18  ;;  %v1674_v56 = vpop.eup %1278 }
 0x2e4   : > { %v728_v62 = vmul.f32 0.5, %v691_v51  ;;  %1282 = vpow2.f32 %v803_v30  ;;  %v850_v51 = vadd.f32 %v1656_v10, %v1654_v0  ;;  %v1678_v60 = vpop.eup %1280 }
 0x2e5   : > { %1284 = vpow2.f32 %v835_v35  ;;  %v854_v11 = vadd.f32 %v1678_v60, %v1674_v56  ;;  %v893_v35 = vmul.f32 %v1642_v53, %v1617_v8 }
 0x2e6   : > { %v744_v12 = vmax.f32 %v712_v58, %v728_v62 }
 0x2e8   : > { %v760_v26 = vsub.f32 %v712_v58, %v744_v12  ;;  %v776_v28 = vsub.f32 %v728_v62, %v744_v12  ;;  %v851_v62 = vadd.f32 %v1660_v40, %v1658_v36  ;;  %v853_v12 = vadd.f32 %v1670_v52, %v1666_v47 }
 0x2ea   : > { %v805_v32 = vmul.f32 1.442695, %v760_v26  ;;  %v837_v41 = vmul.f32 1.442695, %v776_v28  ;;  %v602_v46 = vpop.f32.mrf.mxu2  ;;  %v1682_v2 = vpop.eup %1282 }
 0x2eb   : > { %v694_v29 = vpop.f32.mrf.mxu3  ;;  %v714_v57 = vmul.f32 0.5, %v602_v46  ;;  %v1686_v9 = vpop.eup %1284 }
 0x2ec   : > { %v729_v34 = vmul.f32 0.5, %v694_v29  ;;  %1286 = vpow2.f32 %v805_v32  ;;  %v855_v27 = vadd.f32 %v1686_v9, %v1682_v2 }
 0x2ed   : > { %1288 = vpow2.f32 %v837_v41  ;;  %v894_v41 = vmul.f32 %v1648_v13, %v1631_v23  ;;  %v892_v23 = vmul.f32 %v1640_v48, %v1613_v5 }
 0x2ee   : > { %v745_v39 = vmax.f32 %v713_v33, %v729_v34 }
 0x2f0   : > { %v761_v43 = vsub.f32 %v713_v33, %v745_v39  ;;  %v777_v16 = vsub.f32 %v729_v34, %v745_v39  ;;  %v875_v33 = vmul.f32 %v1638_v45, %v1607_v59  ;;  %v877_v34 = vmul.f32 %v1642_v53, %v1615_v6 }
 0x2f1   : > { %v878_v39 = vmul.f32 %v1648_v13, %v1626_v21  ;;  %v891_v59 = vmul.f32 %v1638_v45, %v1609_v61  ;;  %v876_v21 = vmul.f32 %v1640_v48, %v1611_v63 }
 0x2f2   : > { %v807_v31 = vmul.f32 1.442695, %v761_v43  ;;  %v839_v50 = vmul.f32 1.442695, %v777_v16  ;;  %v1690_v14 = vpop.eup %1286 }
 0x2f3   : > { %v696_v55 = vpop.f32.mrf.mxu3  ;;  %v1692_v19 = vpop.eup %1288 }
 0x2f4   : > { %1290 = vpow2.f32 %v807_v31  ;;  %v730_v58 = vmul.f32 0.5, %v696_v55  ;;  %v856_v29 = vadd.f32 %v1692_v19, %v1690_v14  ;;  %v928_v31 = vmax.f32 %v891_v59, %v893_v35 }
 0x2f5   : > { %1292 = vpow2.f32 %v839_v50  ;;  %v929_v50 = vmax.f32 %v892_v23, %v894_v41 }
 0x2f6   : > { %1294 = vrcp.f32 %v847_v49  ;;  %v746_v3 = vmax.f32 %v714_v57, %v730_v58  ;;  %v907_v49 = vmax.f32 %v875_v33, %v877_v34 }
 0x2f7   : > { %1296 = vrcp.f32 %v848_v54 }
 0x2f8   : > { %1298 = vrcp.f32 %v850_v51  ;;  %v762_v15 = vsub.f32 %v714_v57, %v746_v3  ;;  %v778_v18 = vsub.f32 %v730_v58, %v746_v3 }
 0x2f9   : > { %1300 = vrcp.f32 %v851_v62 }
 0x2fa   : > { %v1694_v20 = vpop.eup %1290  ;;  %1302 = vrcp.f32 %v852_v4  ;;  %v809_v24 = vmul.f32 1.442695, %v762_v15  ;;  %v841_v25 = vmul.f32 1.442695, %v778_v18 }
 0x2fb   : > { %v1698_v26 = vpop.eup %1292  ;;  %1304 = vrcp.f32 %v853_v12 }
 0x2fc   : > { %v1295_v28 = vpop.eup %1294  ;;  %1306 = vpow2.f32 %v809_v24  ;;  %v857_v43 = vadd.f32 %v1698_v26, %v1694_v20 }
 0x2fd   : > { %v1297_v30 = vpop.eup %1296  ;;  %1308 = vpow2.f32 %v841_v25  ;;  %v879_v6 = vmul.f32 %v1295_v28, %v1644_v1  ;;  %v895_v8 = vmul.f32 %v1295_v28, %v1646_v7  ;;  %v908_v1 = vmax.f32 %v876_v21, %v878_v39 }
 0x2fe   : > { %v1299_v32 = vpop.eup %1298  ;;  %1310 = vrcp.f32 %v854_v11  ;;  %v880_v13 = vmul.f32 %v1297_v30, %v1650_v22  ;;  %v896_v61 = vmul.f32 %v1297_v30, %v1652_v17 }
 0x2ff   : > { %v1301_v16 = vpop.eup %1300  ;;  %1312 = vrcp.f32 %v855_v27  ;;  %v909_v54 = vmax.f32 %v907_v49, %v879_v6  ;;  %v930_v55 = vmax.f32 %v928_v31, %v895_v8  ;;  %v882_v63 = vmul.f32 %v1299_v32, %v1654_v0 }
 0x300   : > { %v1303_v53 = vpop.eup %1302  ;;  %1314 = vrcp.f32 %v856_v29  ;;  %v898_v51 = vmul.f32 %v1299_v32, %v1656_v10  ;;  %v910_v48 = vmax.f32 %v908_v1, %v880_v13  ;;  %v883_v22 = vmul.f32 %v1301_v16, %v1658_v36 }
 0x301   : > { %v1305_v46 = vpop.eup %1304  ;;  %1316 = vrcp.f32 %v857_v43  ;;  %v899_v57 = vmul.f32 %v1301_v16, %v1660_v40  ;;  %v931_v17 = vmax.f32 %v929_v50, %v896_v61  ;;  %v911_v4 = vmax.f32 %v909_v54, %v1601_v37 }
 0x302   : > { %v1307_v45 = vpop.eup %1306  ;;  %v884_v3 = vmul.f32 %v1303_v53, %v1662_v42  ;;  %v900_v12 = vmul.f32 %v1303_v53, %v1664_v44  ;;  %v932_v0 = vmax.f32 %v930_v55, %v1603_v38  ;;  %v885_v10 = vmul.f32 %v1305_v46, %v1666_v47 }
 0x303   : > { %v1309_v7 = vpop.eup %1308  ;;  %v901_v18 = vmul.f32 %v1305_v46, %v1670_v52  ;;  %v912_v36 = vmax.f32 %v910_v48, %v882_v63  ;;  %v933_v11 = vmax.f32 %v931_v17, %v898_v51  ;;  %v913_v37 = vmax.f32 %v911_v4, %v883_v22 }
 0x304   : > { %v1311_v5 = vpop.eup %1310  ;;  %v858_v58 = vadd.f32 %v1309_v7, %v1307_v45  ;;  %v934_v27 = vmax.f32 %v932_v0, %v899_v57 }
 0x305   : > { %v1313_v62 = vpop.eup %1312  ;;  %v886_v40 = vmul.f32 %v1311_v5, %v1674_v56  ;;  %v902_v24 = vmul.f32 %v1311_v5, %v1678_v60  ;;  %v914_v28 = vmax.f32 %v912_v36, %v884_v3  ;;  %v935_v38 = vmax.f32 %v933_v11, %v900_v12 }
 0x306   : > { %v1315_v15 = vpop.eup %1314  ;;  %1318 = vrcp.f32 %v858_v58  ;;  %v887_v42 = vmul.f32 %v1313_v62, %v1682_v2  ;;  %v903_v44 = vmul.f32 %v1313_v62, %v1686_v9  ;;  %v915_v29 = vmax.f32 %v913_v37, %v885_v10 }
 0x307   : > { %v1317_v25 = vpop.eup %1316  ;;  %v888_v47 = vmul.f32 %v1315_v15, %v1690_v14  ;;  %v904_v52 = vmul.f32 %v1315_v15, %v1692_v19  ;;  %v936_v30 = vmax.f32 %v934_v27, %v901_v18  ;;  %v916_v33 = vmax.f32 %v914_v28, %v886_v40 }
 0x308   : > { %v937_v34 = vmax.f32 %v935_v38, %v902_v24  ;;  %v889_v56 = vmul.f32 %v1317_v25, %v1694_v20  ;;  %v905_v60 = vmul.f32 %v1317_v25, %v1698_v26  ;;  %v917_v32 = vmax.f32 %v915_v29, %v887_v42 }
 0x309   : > { %v938_v39 = vmax.f32 %v936_v30, %v903_v44  ;;  %v918_v2 = vmax.f32 %v916_v33, %v888_v47 }
 0x30a   : > { %v939_v41 = vmax.f32 %v937_v34, %v904_v52  ;;  %v919_v16 = vmax.f32 %v917_v32, %v889_v56 }
 0x30b   : > { %v940_v59 = vmax.f32 %v938_v39, %v905_v60 }
 0x30c   : > { %v1319_v35 = vpop.eup %1318 }
 0x30d   : > { %v890_v9 = vmul.f32 %v1319_v35, %v1307_v45  ;;  %v906_v43 = vmul.f32 %v1319_v35, %v1309_v7 }
 0x30f   : > { %v920_v14 = vmax.f32 %v918_v2, %v890_v9  ;;  %v941_v6 = vmax.f32 %v939_v41, %v906_v43 }
 0x311   : > { %v921_v19 = vmax.f32 %v919_v16, %v920_v14  ;;  %v942_v8 = vmax.f32 %v940_v59, %v941_v6 }
 0x313   : > { %v922_v53 = vrot.slane %v921_v19, 4  ;;  %v943_v21 = vrot.slane %v942_v8, 4 }
 0x315   : > { %v923_v23 = vmax.f32 %v921_v19, %v922_v53  ;;  %v944_v13 = vmax.f32 %v942_v8, %v943_v21 }
 0x317   : > { %v924_v20 = vrot.slane %v923_v23, 2  ;;  %v945_v46 = vrot.slane %v944_v13, 2 }
 0x319   : > { %v925_v26 = vmax.f32 %v923_v23, %v924_v20  ;;  %v946_v49 = vmax.f32 %v944_v13, %v945_v46  ;;  %951 = sbr.rel (%p1102_p1) target bundleno = 801 (0x321), region = 120 }
 0x31b   : > { %v926_v31 = vrot.slane %v925_v26, 1  ;;  %v947_v61 = vrot.slane %v946_v49, 1 }
 0x31d   : > { %v927_v1 = vmax.f32 %v925_v26, %v926_v31  ;;  %v948_v50 = vmax.f32 %v946_v49, %v947_v61 }
 0x31e   : > { %vm954_vm5 = vcmask 1041409  }
 0x31f   : > { %v955_v45 = vsel %vm954_vm5, %v948_v50, %v927_v1 }
 0x320   : > { %957 = vst [vmem:[%s1539_s17] sm:$0x3] %v955_v45 }
 0x321 PF: > { %p1126_p2 = scmp.le.s32.totalorder %s1374_s28, 0 }
 0x323   : > { %961 = sbr.rel (%p1126_p2) target bundleno = 813 (0x32d), region = 124 }
 0x328   : > { %v962_v7 = vld [vmem:[%s1539_s17] sm:$0x3]  ;;  %vm965_vm6 = vcmask 1041409  }
 0x329   : > { %v966_v54 = vsel %vm965_vm6, %v948_v50, %v927_v1 }
 0x32a   : > { %v968_v55 = vmax.f32 %v962_v7, %v966_v54 }
 0x32c   : > { %969 = vst [vmem:[%s1539_s17] sm:$0x3] %v968_v55 }
 0x32d PF: > { %s18_s9 = sadd.s32 1, %s1390_s9   ;;  %s1793_s29 = sld [smem:[#allocation5_spill]] }
 0x32e   : > { %p15_p3 = scmp.ge.s32.totalorder %s18_s9, 6   ;;  %s1794_s11 = sld [smem:[#allocation6_spill]] }
 0x32f   : > { %s1795_s8 = sld [smem:[#allocation7_spill]]  ;;  %s1796_s24 = smov %s1362_s25 }
 0x330   : > { %s1797_s25 = smov %s1500_s16  ;;  %s1798_s26 = smov %s1370_s27 }
 0x331   : > { %s1799_s27 = smov %s1509_s19  ;;  %s1800_s28 = smov %s1382_s30 }
 0x332   :  { %17 = sbr.rel (!%p15_p3) target bundleno = 5 (0x5), region = 182 }
 0x334   : > { %s1801_s30 = smov %s1794_s11 }

</bundles_post_ra>
